<compile_context>
chip_gen: v7x
topology: tpu7x:2x2x1
jax: 0.10.0
libtpu: 0.0.40
codegen_flags: <defaults>
</compile_context>

<pallas_src>
import functools
import math

import jax
import jax.numpy as jnp
from jax.experimental import pallas as pl
from jax.experimental.pallas import tpu as pltpu


@functools.lru_cache(maxsize=1)
def _vmem_limit_bytes():
    """Generation-aware scoped-VMEM budget: ~96 MiB on v5e/v6e (128 MiB physical
    VMEM), 48 MiB on v7x (64 MiB physical)."""
    cap = None
    try:
        cap = getattr(pltpu.get_tpu_info(), "vmem_capacity_bytes", None)
    except Exception:
        cap = None
    if cap is not None and cap >= 100 * 1024 * 1024:
        return 96 * 1024 * 1024
    return 48 * 1024 * 1024


def _pick_tile(dim, preferred, granule):
    """Largest tile <= preferred that divides `dim` and is a multiple of
    `granule`; falls back to the full dim (a full-extent block is always legal)."""
    if dim <= preferred:
        return dim
    t = (preferred // granule) * granule
    while t >= granule:
        if dim % t == 0:
            return t
        t -= granule
    # TODO(synk): pad the array instead of a full-extent fallback for awkward dims.
    return dim


def _gelu(y):
    # TODO(synk): HF BERT default 'gelu' is erf-based; tanh approximation is
    # used because lax.erf is not guaranteed to lower through Mosaic.
    return 0.5 * y * (1.0 + jnp.tanh(0.7978845608028654 * (y + 0.044715 * y * y * y)))


# ------------------------- tiled GEMM (+ fused activation) -------------------------

def _linear_kernel_fullk(x_ref, w_ref, b_ref, o_ref, *, act):
    """Single-K-step GEMM: no accumulator scratch, no K grid axis."""
    y = jnp.dot(x_ref[...].astype(jnp.bfloat16),
                w_ref[...].astype(jnp.bfloat16),
                preferred_element_type=jnp.float32) + b_ref[...]
    if act == "gelu":
        y = _gelu(y)
    elif act == "tanh":
        y = jnp.tanh(y)
    o_ref[...] = y.astype(o_ref.dtype)


def _linear_kernel_acc(x_ref, w_ref, b_ref, o_ref, acc_ref, *, act):
    k = pl.program_id(2)

    @pl.when(k == 0)
    def _():
        acc_ref[...] = jnp.zeros_like(acc_ref)

    acc_ref[...] += jnp.dot(x_ref[...].astype(jnp.bfloat16),
                            w_ref[...].astype(jnp.bfloat16),
                            preferred_element_type=jnp.float32)

    @pl.when(k == pl.num_programs(2) - 1)
    def _():
        y = acc_ref[...] + b_ref[...]
        if act == "gelu":
            y = _gelu(y)
        elif act == "tanh":
            y = jnp.tanh(y)
        o_ref[...] = y.astype(o_ref.dtype)


def linear(x, w, b, act=None, out_dtype=None):
    """y = x @ w + b (+ fused activation). x:(M,K) w:(K,N) b:(N,).
    bf16 MXU inputs, f32 accumulation. If K fits in one tile the K grid axis
    (and the accumulator RMW) is removed entirely."""
    M, K = x.shape
    N = w.shape[1]
    out_dtype = out_dtype or x.dtype
    tm = _pick_tile(M, 512, 16)
    tn = _pick_tile(N, 512, 128)
    tk = _pick_tile(K, 1024, 128)
    bytes_accessed = (x.size * x.dtype.itemsize + w.size * w.dtype.itemsize
                      + M * N * jnp.dtype(out_dtype).itemsize)
    cost = pl.CostEstimate(flops=2 * M * N * K,
                           transcendentals=(M * N if act else 0),
                           bytes_accessed=bytes_accessed)

    if tk == K:
        return pl.pallas_call(
            functools.partial(_linear_kernel_fullk, act=act),
            out_shape=jax.ShapeDtypeStruct((M, N), out_dtype),
            grid=(M // tm, N // tn),
            in_specs=[
                pl.BlockSpec((tm, K), lambda i, j: (i, 0)),
                pl.BlockSpec((K, tn), lambda i, j: (0, j)),
                pl.BlockSpec((1, tn), lambda i, j: (0, j)),
            ],
            out_specs=pl.BlockSpec((tm, tn), lambda i, j: (i, j)),
            compiler_params=pltpu.CompilerParams(
                dimension_semantics=("parallel", "parallel"),
                vmem_limit_bytes=_vmem_limit_bytes()),
            cost_estimate=cost,
        )(x, w, b.reshape(1, N))

    return pl.pallas_call(
        functools.partial(_linear_kernel_acc, act=act),
        out_shape=jax.ShapeDtypeStruct((M, N), out_dtype),
        grid=(M // tm, N // tn, K // tk),
        in_specs=[
            pl.BlockSpec((tm, tk), lambda i, j, k: (i, k)),
            pl.BlockSpec((tk, tn), lambda i, j, k: (k, j)),
            pl.BlockSpec((1, tn), lambda i, j, k: (0, j)),
        ],
        out_specs=pl.BlockSpec((tm, tn), lambda i, j, k: (i, j)),
        scratch_shapes=[pltpu.VMEM((tm, tn), jnp.float32)],
        compiler_params=pltpu.CompilerParams(
            dimension_semantics=("parallel", "parallel", "arbitrary"),
            vmem_limit_bytes=_vmem_limit_bytes()),
        cost_estimate=cost,
    )(x, w, b.reshape(1, N))


# ------------------- GEMM with fused residual-add + LayerNorm epilogue -------------------

def _linear_res_ln_kernel(x_ref, w_ref, b_ref, r_ref, g_ref, bb_ref, o_ref, acc_ref, *, eps):
    k = pl.program_id(1)

    @pl.when(k == 0)
    def _():
        acc_ref[...] = jnp.zeros_like(acc_ref)

    acc_ref[...] += jnp.dot(x_ref[...].astype(jnp.bfloat16),
                            w_ref[...].astype(jnp.bfloat16),
                            preferred_element_type=jnp.float32)

    @pl.when(k == pl.num_programs(1) - 1)
    def _():
        h = acc_ref[...] + b_ref[...] + r_ref[...].astype(jnp.float32)
        mean = jnp.mean(h, axis=-1, keepdims=True)
        var = jnp.mean((h - mean) ** 2, axis=-1, keepdims=True)
        norm = (h - mean) * jax.lax.rsqrt(var + eps)
        o_ref[...] = (norm * g_ref[...] + bb_ref[...]).astype(o_ref.dtype)


def linear_residual_layernorm(x, w, b, residual, gamma, beta, eps=1e-12,
                              out_dtype=jnp.bfloat16):
    """LayerNorm(x @ w + b + residual): dense with the residual-add + LN fused
    into the epilogue. Full N per block (LN reduces over N); tiled over M, K.
    LN math is f32; output is bf16 to halve HBM traffic of the hidden tensor."""
    M, K = x.shape
    N = w.shape[1]
    tm = _pick_tile(M, 512, 16)
    tk = _pick_tile(K, 1536, 128)
    grid = (M // tm, K // tk)
    bytes_accessed = (x.size * x.dtype.itemsize + w.size * w.dtype.itemsize
                      + 2 * M * N * jnp.dtype(out_dtype).itemsize)
    return pl.pallas_call(
        functools.partial(_linear_res_ln_kernel, eps=eps),
        out_shape=jax.ShapeDtypeStruct((M, N), out_dtype),
        grid=grid,
        in_specs=[
            pl.BlockSpec((tm, tk), lambda i, k: (i, k)),
            pl.BlockSpec((tk, N), lambda i, k: (k, 0)),
            pl.BlockSpec((1, N), lambda i, k: (0, 0)),
            pl.BlockSpec((tm, N), lambda i, k: (i, 0)),   # residual (fetched once per i)
            pl.BlockSpec((1, N), lambda i, k: (0, 0)),
            pl.BlockSpec((1, N), lambda i, k: (0, 0)),
        ],
        out_specs=pl.BlockSpec((tm, N), lambda i, k: (i, 0)),
        scratch_shapes=[pltpu.VMEM((tm, N), jnp.float32)],
        compiler_params=pltpu.CompilerParams(
            dimension_semantics=("parallel", "arbitrary"),
            vmem_limit_bytes=_vmem_limit_bytes()),
        cost_estimate=pl.CostEstimate(
            flops=2 * M * N * K + 10 * M * N,
            transcendentals=0,
            bytes_accessed=bytes_accessed),
    )(x, w, b.reshape(1, N), residual, gamma.reshape(1, N), beta.reshape(1, N))


# ------------------------- embeddings: fused (we + pe + te) + LayerNorm -------------------------

def _emb_ln_kernel(we_ref, pe_ref, te_ref, g_ref, b_ref, o_ref, *, eps):
    h = (we_ref[0].astype(jnp.float32) + pe_ref[...].astype(jnp.float32)
         + te_ref[0].astype(jnp.float32))
    mean = jnp.mean(h, axis=-1, keepdims=True)
    var = jnp.mean((h - mean) ** 2, axis=-1, keepdims=True)
    norm = (h - mean) * jax.lax.rsqrt(var + eps)
    o_ref[0] = (norm * g_ref[...] + b_ref[...]).astype(o_ref.dtype)


def embeddings_layernorm(we, pe, te, gamma, beta, eps=1e-12, out_dtype=jnp.bfloat16):
    """LayerNorm(word_emb + pos_emb + tok_emb). we/te: (B,S,H), pe: (S,H) is
    broadcast over batch via the index map (never materialized at (B,S,H))."""
    B, S, H = we.shape
    ts = _pick_tile(S, 1024, 8)
    return pl.pallas_call(
        functools.partial(_emb_ln_kernel, eps=eps),
        out_shape=jax.ShapeDtypeStruct((B, S, H), out_dtype),
        grid=(B, S // ts),
        in_specs=[
            pl.BlockSpec((1, ts, H), lambda b, s: (b, s, 0)),
            pl.BlockSpec((ts, H), lambda b, s: (s, 0)),
            pl.BlockSpec((1, ts, H), lambda b, s: (b, s, 0)),
            pl.BlockSpec((1, H), lambda b, s: (0, 0)),
            pl.BlockSpec((1, H), lambda b, s: (0, 0)),
        ],
        out_specs=pl.BlockSpec((1, ts, H), lambda b, s: (b, s, 0)),
        compiler_params=pltpu.CompilerParams(
            dimension_semantics=("parallel", "parallel"),
            vmem_limit_bytes=_vmem_limit_bytes()),
    )(we, pe, te, gamma.reshape(1, H), beta.reshape(1, H))


# ------------------------- flash (online-softmax) self-attention -------------------------

def _flash_attn_kernel(q_ref, k_ref, v_ref, mask_ref, o_ref, m_sc, l_sc, acc_sc,
                       *, scale, nh, dh):
    kv = pl.program_id(2)

    @pl.when(kv == 0)
    def _():
        m_sc[...] = jnp.full(m_sc.shape, -jnp.inf, m_sc.dtype)
        l_sc[...] = jnp.zeros_like(l_sc)
        acc_sc[...] = jnp.zeros_like(acc_sc)

    mask = mask_ref[0]                                      # (1, tk) additive mask

    # Static head loop: heads sit in the (sublane, lane) block dims so dynamic
    # per-head slicing / a head grid axis is not layout-legal without an HBM
    # transpose of the QKV tensor; tq=128 keeps each head's (tq, tk) f32 score
    # and exp tiles within vreg budget instead.
    for h in range(nh):
        q = q_ref[0, :, 0, h, :].astype(jnp.bfloat16)       # (tq, dh)
        k = k_ref[0, :, 0, h, :].astype(jnp.bfloat16)       # (tk, dh)
        v = v_ref[0, :, 0, h, :].astype(jnp.bfloat16)       # (tk, dh)

        s = jax.lax.dot_general(q, k, (((1,), (1,)), ((), ())),
                                preferred_element_type=jnp.float32)   # (tq, tk)
        s = s * scale + mask                                # broadcasts over query rows

        m_prev = m_sc[h]                                    # (tq, 1)
        m_new = jnp.maximum(m_prev, jnp.max(s, axis=-1, keepdims=True))
        alpha = jnp.exp(m_prev - m_new)
        p = jnp.exp(s - m_new)                              # (tq, tk), f32
        l_sc[h] = alpha * l_sc[h] + jnp.sum(p, axis=-1, keepdims=True)
        acc_sc[h] = alpha * acc_sc[h] + jnp.dot(
            p.astype(jnp.bfloat16), v, preferred_element_type=jnp.float32)
        m_sc[h] = m_new

    @pl.when(kv == pl.num_programs(2) - 1)
    def _():
        # Lane-dense epilogue: assemble the full (tq, NH*Dh) tile and do one
        # unmasked store instead of NH separate dh-wide partial stores.
        parts = [acc_sc[h] * pl.reciprocal(l_sc[h], approx=True) for h in range(nh)]
        o_ref[0] = jnp.concatenate(parts, axis=-1).astype(o_ref.dtype)


def attention(qkv, ext_mask, scale, out_dtype=jnp.bfloat16):
    """qkv: (B, S, 3, NH, Dh) from the fused QKV projection (no JAX transposes);
    ext_mask: (B, 1, S) additive. Online-softmax over KV tiles. Returns context
    in (B, S, NH*Dh) layout (lane-dense, ready for the output dense)."""
    B, S, _, NH, Dh = qkv.shape
    H = NH * Dh
    tq = _pick_tile(S, 128, 16)
    tk = _pick_tile(S, 256, 128)
    grid = (B, S // tq, S // tk)
    # TODO(synk): on v5e, pipeline_mode=pl.Buffered(3) on the K/V specs would hide
    # more K/V fetch latency behind the Dh-wide matmuls.
    return pl.pallas_call(
        functools.partial(_flash_attn_kernel, scale=scale, nh=NH, dh=Dh),
        out_shape=jax.ShapeDtypeStruct((B, S, H), out_dtype),
        grid=grid,
        in_specs=[
            pl.BlockSpec((1, tq, 1, NH, Dh), lambda b, qi, ki: (b, qi, 0, 0, 0)),  # Q
            pl.BlockSpec((1, tk, 1, NH, Dh), lambda b, qi, ki: (b, ki, 1, 0, 0)),  # K
            pl.BlockSpec((1, tk, 1, NH, Dh), lambda b, qi, ki: (b, ki, 2, 0, 0)),  # V
            pl.BlockSpec((1, 1, tk), lambda b, qi, ki: (b, 0, ki)),                # mask
        ],
        out_specs=pl.BlockSpec((1, tq, H), lambda b, qi, ki: (b, qi, 0)),
        scratch_shapes=[
            pltpu.VMEM((NH, tq, 1), jnp.float32),     # running max
            pltpu.VMEM((NH, tq, 1), jnp.float32),     # running denom
            pltpu.VMEM((NH, tq, Dh), jnp.float32),    # running numerator
        ],
        compiler_params=pltpu.CompilerParams(
            dimension_semantics=("parallel", "parallel", "arbitrary"),
            vmem_limit_bytes=_vmem_limit_bytes()),
    )(qkv, qkv, qkv, ext_mask)


# ------------------------- model glue -------------------------

def init_params(key, cfg):
    H, I = cfg["hidden"], cfg["intermediate"]
    V, P, T, L = cfg["vocab"], cfg["max_pos"], cfg["type_vocab"], cfg["layers"]
    keys = iter(jax.random.split(key, 256))

    def nrm(shape, scale=0.02, dtype=jnp.float32):
        return (scale * jax.random.normal(next(keys), shape, jnp.float32)).astype(dtype)

    wdt = jnp.bfloat16  # matmul weights pre-cast once to bf16 (MXU-native); f32 accumulation in-kernel

    params = {
        "word_emb": nrm((V, H)),
        "pos_emb": nrm((P, H)),
        "tok_emb": nrm((T, H)),
        "emb_ln_g": jnp.ones((H,), jnp.float32),
        "emb_ln_b": jnp.zeros((H,), jnp.float32),
        "pool_w": nrm((H, H), dtype=wdt),
        "pool_b": jnp.zeros((H,), jnp.float32),
        "layers": [],
    }
    for _ in range(L):
        q_w, k_w, v_w = nrm((H, H), dtype=wdt), nrm((H, H), dtype=wdt), nrm((H, H), dtype=wdt)
        q_b, k_b, v_b = nrm((H,)), nrm((H,)), nrm((H,))
        params["layers"].append({
            # fused Q/K/V projection: one (H, 3H) GEMM instead of three (H, H) GEMMs
            "qkv_w": jnp.concatenate([q_w, k_w, v_w], axis=1),
            "qkv_b": jnp.concatenate([q_b, k_b, v_b], axis=0),
            "ao_w": nrm((H, H), dtype=wdt), "ao_b": nrm((H,)),
            "ln1_g": jnp.ones((H,), jnp.float32), "ln1_b": jnp.zeros((H,), jnp.float32),
            "i_w": nrm((H, I), dtype=wdt), "i_b": nrm((I,)),
            "o_w": nrm((I, H), dtype=wdt), "o_b": nrm((H,)),
            "ln2_g": jnp.ones((H,), jnp.float32), "ln2_b": jnp.zeros((H,), jnp.float32),
        })
    return params


def bert_layer(h2, layer_p, ext_mask, B, S, NH, Dh):
    """One BertLayer. h2: (B*S, H) bf16 -> (B*S, H) bf16."""
    H = NH * Dh
    # Fused Q/K/V projection (BitAdditiveBias with offsets=None is a no-op).
    qkv = linear(h2, layer_p["qkv_w"], layer_p["qkv_b"], out_dtype=jnp.bfloat16)   # (B*S, 3H)
    qkv = qkv.reshape(B, S, 3, NH, Dh)                     # free row-major reshape

    ctx = attention(qkv, ext_mask, 1.0 / math.sqrt(Dh))    # (B, S, H), no head transposes
    ctx = ctx.reshape(B * S, H)

    # BertSelfOutput: dense + dropout(noop) + LayerNorm(residual) fused in one kernel.
    attn_out = linear_residual_layernorm(ctx, layer_p["ao_w"], layer_p["ao_b"],
                                         h2, layer_p["ln1_g"], layer_p["ln1_b"])

    # BertIntermediate (gelu) + BertOutput (dense + LayerNorm(residual)), both fused.
    inter = linear(attn_out, layer_p["i_w"], layer_p["i_b"], act="gelu",
                   out_dtype=jnp.bfloat16)
    return linear_residual_layernorm(inter, layer_p["o_w"], layer_p["o_b"],
                                     attn_out, layer_p["ln2_g"], layer_p["ln2_b"])


def bit_model_forward(params, input_ids, attention_mask, token_type_ids, cfg):
    B, S = input_ids.shape
    H, NH = cfg["hidden"], cfg["heads"]
    Dh = H // NH

    # --- embeddings (gathers are JAX glue; we+pe+te add fused into the LN kernel) ---
    we = params["word_emb"][input_ids]                              # (B, S, H)
    pe = params["pos_emb"][:S]                                      # (S, H)
    te = params["tok_emb"][token_type_ids]                          # (B, S, H)
    emb = embeddings_layernorm(we, pe, te,
                               params["emb_ln_g"], params["emb_ln_b"])  # (B, S, H) bf16
    h2 = emb.reshape(B * S, H)

    # --- extended attention mask: (1 - mask) * -10000, additive (B, 1, S) ---
    ext_mask = ((1.0 - attention_mask.astype(jnp.float32)) * -10000.0).reshape(B, 1, S)

    # --- encoder ---
    for layer_p in params["layers"]:
        h2 = bert_layer(h2, layer_p, ext_mask, B, S, NH, Dh)
    sequence_output = h2.reshape(B, S, H).astype(jnp.float32)

    # --- pooler: dense(first token) + tanh ---
    first_token = h2.reshape(B, S, H)[:, 0]                         # (B, H) bf16
    pooled_output = linear(first_token, params["pool_w"], params["pool_b"],
                           act="tanh", out_dtype=jnp.float32)

    return sequence_output, pooled_output


# ------------------------- main -------------------------

if __name__ == "__main__":
    cfg = dict(vocab=32, hidden=32, heads=2, intermediate=64,
               layers=2, max_pos=16, type_vocab=2)
    B, S = 2, 8

    key = jax.random.PRNGKey(0)
    k_param, k_ids = jax.random.split(key)
    params = init_params(k_param, cfg)

    input_ids = jax.random.randint(k_ids, (B, S), 0, cfg["vocab"], dtype=jnp.int32)
    attention_mask = jnp.ones((B, S), jnp.float32)
    token_type_ids = jnp.zeros((B, S), jnp.int32)

    fwd = jax.jit(functools.partial(bit_model_forward, cfg=cfg))
    seq_out, pooled = fwd(params, input_ids, attention_mask, token_type_ids)
    jax.block_until_ready((seq_out, pooled))

    assert seq_out.shape == (B, S, cfg["hidden"])
    assert pooled.shape == (B, cfg["hidden"])
    print("KERNEL_OK")
</pallas_src>

<mosaic_0001>
module attributes {stable_mosaic.version = 11 : i64} {
  func.func @_linear_kernel_fullk(%arg0: i32, %arg1: i32, %arg2: memref<16x32xbf16, #tpu.memory_space<vmem>>, %arg3: memref<32x96xbf16, #tpu.memory_space<vmem>>, %arg4: memref<1x96xf32, #tpu.memory_space<vmem>>, %arg5: memref<16x96xbf16, #tpu.memory_space<vmem>>) attributes {dimension_semantics = [#tpu.dimension_semantics<parallel>, #tpu.dimension_semantics<parallel>], iteration_bounds = array<i64: 1, 1>, scalar_prefetch = 0 : i64, scratch_operands = 0 : i64, tpu.core_type = #tpu.core_type<tc>, window_params = [{transform_indices = @transform_0, window_bounds = array<i64: 16, 32>}, {transform_indices = @transform_1, window_bounds = array<i64: 32, 96>}, {transform_indices = @transform_2, window_bounds = array<i64: 1, 96>}, {transform_indices = @transform_3, window_bounds = array<i64: 16, 96>}]} {
    %c0 = arith.constant 0 : index
    %c0_0 = arith.constant 0 : index
    %0 = vector.load %arg2[%c0, %c0_0] : memref<16x32xbf16, #tpu.memory_space<vmem>>, vector<16x32xbf16>
    %c0_1 = arith.constant 0 : index
    %c0_2 = arith.constant 0 : index
    %1 = vector.load %arg3[%c0_1, %c0_2] : memref<32x96xbf16, #tpu.memory_space<vmem>>, vector<32x96xbf16>
    %cst = arith.constant dense<0.000000e+00> : vector<16x96xf32>
    %2 = tpu.matmul %0, %1, %cst {dimension_numbers = #tpu.dot_dimension_numbers<[1], [0], [0], [1], [0, 0, 1, 1], [], []>} : vector<16x32xbf16>, vector<32x96xbf16>, vector<16x96xf32> -> vector<16x96xf32>
    %c0_3 = arith.constant 0 : index
    %c0_4 = arith.constant 0 : index
    %3 = vector.load %arg4[%c0_3, %c0_4] : memref<1x96xf32, #tpu.memory_space<vmem>>, vector<1x96xf32>
    %4 = vector.broadcast %3 : vector<1x96xf32> to vector<16x96xf32>
    %5 = arith.addf %2, %4 : vector<16x96xf32>
    %6 = arith.truncf %5 : vector<16x96xf32> to vector<16x96xbf16>
    %c0_5 = arith.constant 0 : index
    %c0_6 = arith.constant 0 : index
    %7 = vector.load %arg5[%c0_5, %c0_6] : memref<16x96xbf16, #tpu.memory_space<vmem>>, vector<16x96xbf16>
    tpu.vector_store %arg5[%c0_5, %c0_6], %6 {strides = array<i32>} : memref<16x96xbf16, #tpu.memory_space<vmem>>, vector<16x96xbf16>,
    return
  }
  func.func @transform_0(%arg0: i32, %arg1: i32) -> (i32, i32) {
    %c0_i32 = arith.constant 0 : i32
    %c0_i32_0 = arith.constant 0 : i32
    return %arg0, %c0_i32 : i32, i32
  }
  func.func @transform_1(%arg0: i32, %arg1: i32) -> (i32, i32) {
    %c0_i32 = arith.constant 0 : i32
    %c0_i32_0 = arith.constant 0 : i32
    return %c0_i32, %arg1 : i32, i32
  }
  func.func @transform_2(%arg0: i32, %arg1: i32) -> (i32, i32) {
    %c0_i32 = arith.constant 0 : i32
    %c0_i32_0 = arith.constant 0 : i32
    return %c0_i32, %arg1 : i32, i32
  }
  func.func @transform_3(%arg0: i32, %arg1: i32) -> (i32, i32) {
    %c0_i32 = arith.constant 0 : i32
    return %arg0, %arg1 : i32, i32
  }
}

module attributes {stable_mosaic.version = 11 : i64} {
  func.func @_emb_ln_kernel(%arg0: i32, %arg1: i32, %arg2: memref<1x8x32xf32, #tpu.memory_space<vmem>>, %arg3: memref<8x32xf32, #tpu.memory_space<vmem>>, %arg4: memref<1x8x32xf32, #tpu.memory_space<vmem>>, %arg5: memref<1x32xf32, #tpu.memory_space<vmem>>, %arg6: memref<1x32xf32, #tpu.memory_space<vmem>>, %arg7: memref<1x8x32xbf16, #tpu.memory_space<vmem>>) attributes {dimension_semantics = [#tpu.dimension_semantics<parallel>, #tpu.dimension_semantics<parallel>], iteration_bounds = array<i64: 2, 1>, scalar_prefetch = 0 : i64, scratch_operands = 0 : i64, tpu.core_type = #tpu.core_type<tc>, window_params = [{transform_indices = @transform_0, window_bounds = array<i64: 1, 8, 32>}, {transform_indices = @transform_1, window_bounds = array<i64: 8, 32>}, {transform_indices = @transform_2, window_bounds = array<i64: 1, 8, 32>}, {pipeline_mode = #tpu.pipeline_mode<synchronous>, transform_indices = @transform_3, window_bounds = array<i64: 1, 32>}, {pipeline_mode = #tpu.pipeline_mode<synchronous>, transform_indices = @transform_4, window_bounds = array<i64: 1, 32>}, {transform_indices = @transform_5, window_bounds = array<i64: 1, 8, 32>}]} {
    %c0 = arith.constant 0 : index
    %c0_0 = arith.constant 0 : index
    %c0_1 = arith.constant 0 : index
    %0 = vector.load %arg2[%c0, %c0_0, %c0_1] : memref<1x8x32xf32, #tpu.memory_space<vmem>>, vector<1x8x32xf32>
    %1 = vector.shape_cast %0 : vector<1x8x32xf32> to vector<8x32xf32>
    %c0_2 = arith.constant 0 : index
    %c0_3 = arith.constant 0 : index
    %2 = vector.load %arg3[%c0_2, %c0_3] : memref<8x32xf32, #tpu.memory_space<vmem>>, vector<8x32xf32>
    %3 = arith.addf %1, %2 : vector<8x32xf32>
    %c0_4 = arith.constant 0 : index
    %c0_5 = arith.constant 0 : index
    %c0_6 = arith.constant 0 : index
    %4 = vector.load %arg4[%c0_4, %c0_5, %c0_6] : memref<1x8x32xf32, #tpu.memory_space<vmem>>, vector<1x8x32xf32>
    %5 = vector.shape_cast %4 : vector<1x8x32xf32> to vector<8x32xf32>
    %6 = arith.addf %3, %5 : vector<8x32xf32>
    %cst = arith.constant dense<0.000000e+00> : vector<8xf32>
    %7 = vector.multi_reduction <add>, %6, %cst [1] : vector<8x32xf32> to vector<8xf32>
    %8 = vector.shape_cast %7 : vector<8xf32> to vector<8x1xf32>
    %cst_7 = arith.constant 3.200000e+01 : f32
    %9 = vector.broadcast %cst_7 : f32 to vector<8x1xf32>
    %10 = arith.divf %8, %9 : vector<8x1xf32>
    %11 = vector.broadcast %10 : vector<8x1xf32> to vector<8x32xf32>
    %12 = arith.subf %6, %11 : vector<8x32xf32>
    %13 = arith.mulf %12, %12 : vector<8x32xf32>
    %cst_8 = arith.constant dense<0.000000e+00> : vector<8xf32>
    %14 = vector.multi_reduction <add>, %13, %cst_8 [1] : vector<8x32xf32> to vector<8xf32>
    %15 = vector.shape_cast %14 : vector<8xf32> to vector<8x1xf32>
    %cst_9 = arith.constant 3.200000e+01 : f32
    %16 = vector.broadcast %cst_9 : f32 to vector<8x1xf32>
    %17 = arith.divf %15, %16 : vector<8x1xf32>
    %18 = vector.broadcast %10 : vector<8x1xf32> to vector<8x32xf32>
    %19 = arith.subf %6, %18 : vector<8x32xf32>
    %cst_10 = arith.constant 9.99999996E-13 : f32
    %20 = vector.broadcast %cst_10 : f32 to vector<8x1xf32>
    %21 = arith.addf %17, %20 : vector<8x1xf32>
    %22 = math.rsqrt %21 : vector<8x1xf32>
    %23 = vector.broadcast %22 : vector<8x1xf32> to vector<8x32xf32>
    %24 = arith.mulf %19, %23 : vector<8x32xf32>
    %c0_11 = arith.constant 0 : index
    %c0_12 = arith.constant 0 : index
    %25 = vector.load %arg5[%c0_11, %c0_12] : memref<1x32xf32, #tpu.memory_space<vmem>>, vector<1x32xf32>
    %26 = vector.broadcast %25 : vector<1x32xf32> to vector<8x32xf32>
    %27 = arith.mulf %24, %26 : vector<8x32xf32>
    %c0_13 = arith.constant 0 : index
    %c0_14 = arith.constant 0 : index
    %28 = vector.load %arg6[%c0_13, %c0_14] : memref<1x32xf32, #tpu.memory_space<vmem>>, vector<1x32xf32>
    %29 = vector.broadcast %28 : vector<1x32xf32> to vector<8x32xf32>
    %30 = arith.addf %27, %29 : vector<8x32xf32>
    %31 = arith.truncf %30 : vector<8x32xf32> to vector<8x32xbf16>
    %c0_15 = arith.constant 0 : index
    %c0_16 = arith.constant 0 : index
    %c0_17 = arith.constant 0 : index
    %32 = vector.load %arg7[%c0_15, %c0_16, %c0_17] : memref<1x8x32xbf16, #tpu.memory_space<vmem>>, vector<1x8x32xbf16>
    %33 = vector.shape_cast %32 : vector<1x8x32xbf16> to vector<8x32xbf16>
    %34 = vector.shape_cast %31 : vector<8x32xbf16> to vector<1x8x32xbf16>
    tpu.vector_store %arg7[%c0_15, %c0_16, %c0_17], %34 {strides = array<i32>} : memref<1x8x32xbf16, #tpu.memory_space<vmem>>, vector<1x8x32xbf16>,
    return
  }
  func.func @transform_0(%arg0: i32, %arg1: i32) -> (i32, i32, i32) {
    %c0_i32 = arith.constant 0 : i32
    %c0_i32_0 = arith.constant 0 : i32
    return %arg0, %arg1, %c0_i32 : i32, i32, i32
  }
  func.func @transform_1(%arg0: i32, %arg1: i32) -> (i32, i32) {
    %c0_i32 = arith.constant 0 : i32
    %c0_i32_0 = arith.constant 0 : i32
    return %arg1, %c0_i32 : i32, i32
  }
  func.func @transform_2(%arg0: i32, %arg1: i32) -> (i32, i32, i32) {
    %c0_i32 = arith.constant 0 : i32
    %c0_i32_0 = arith.constant 0 : i32
    return %arg0, %arg1, %c0_i32 : i32, i32, i32
  }
  func.func @transform_3(%arg0: i32, %arg1: i32) -> (i32, i32) {
    %c0_i32 = arith.constant 0 : i32
    %c0_i32_0 = arith.constant 0 : i32
    %c0_i32_1 = arith.constant 0 : i32
    return %c0_i32, %c0_i32_0 : i32, i32
  }
  func.func @transform_4(%arg0: i32, %arg1: i32) -> (i32, i32) {
    %c0_i32 = arith.constant 0 : i32
    %c0_i32_0 = arith.constant 0 : i32
    %c0_i32_1 = arith.constant 0 : i32
    return %c0_i32, %c0_i32_0 : i32, i32
  }
  func.func @transform_5(%arg0: i32, %arg1: i32) -> (i32, i32, i32) {
    %c0_i32 = arith.constant 0 : i32
    %c0_i32_0 = arith.constant 0 : i32
    return %arg0, %arg1, %c0_i32 : i32, i32, i32
  }
}

module attributes {stable_mosaic.version = 11 : i64} {
  func.func @_flash_attn_kernel(%arg0: i32, %arg1: i32, %arg2: i32, %arg3: memref<1x8x1x2x16xbf16, #tpu.memory_space<vmem>>, %arg4: memref<1x8x1x2x16xbf16, #tpu.memory_space<vmem>>, %arg5: memref<1x8x1x2x16xbf16, #tpu.memory_space<vmem>>, %arg6: memref<1x1x8xf32, #tpu.memory_space<vmem>>, %arg7: memref<1x8x32xbf16, #tpu.memory_space<vmem>>, %arg8: memref<2x8x1xf32, #tpu.memory_space<vmem>>, %arg9: memref<2x8x1xf32, #tpu.memory_space<vmem>>, %arg10: memref<2x8x16xf32, #tpu.memory_space<vmem>>) attributes {dimension_semantics = [#tpu.dimension_semantics<parallel>, #tpu.dimension_semantics<parallel>, #tpu.dimension_semantics<arbitrary>], iteration_bounds = array<i64: 2, 1, 1>, scalar_prefetch = 0 : i64, scratch_operands = 3 : i64, tpu.core_type = #tpu.core_type<tc>, window_params = [{transform_indices = @transform_0, window_bounds = array<i64: 1, 8, 1, 2, 16>}, {transform_indices = @transform_1, window_bounds = array<i64: 1, 8, 1, 2, 16>}, {transform_indices = @transform_2, window_bounds = array<i64: 1, 8, 1, 2, 16>}, {transform_indices = @transform_3, window_bounds = array<i64: 1, 1, 8>}, {transform_indices = @transform_4, window_bounds = array<i64: 1, 8, 32>}]} {
    %c0_i32 = arith.constant 0 : i32
    %0 = arith.cmpi eq, %arg2, %c0_i32 : i32
    %1 = arith.extui %0 : i1 to i32
    %c0_i32_0 = arith.constant 0 : i32
    %2 = arith.cmpi ne, %1, %c0_i32_0 : i32
    scf.if %2 {
      %cst_79 = arith.constant 0xFF800000 : f32
      %94 = vector.broadcast %cst_79 : f32 to vector<2x8x1xf32>
      %c0_80 = arith.constant 0 : index
      %c0_81 = arith.constant 0 : index
      %c0_82 = arith.constant 0 : index
      %95 = vector.load %arg8[%c0_80, %c0_81, %c0_82] : memref<2x8x1xf32, #tpu.memory_space<vmem>>, vector<2x8x1xf32>
      tpu.vector_store %arg8[%c0_80, %c0_81, %c0_82], %94 {strides = array<i32>} : memref<2x8x1xf32, #tpu.memory_space<vmem>>, vector<2x8x1xf32>,
      %cst_83 = arith.constant 0.000000e+00 : f32
      %96 = vector.broadcast %cst_83 : f32 to vector<2x8x1xf32>
      %c0_84 = arith.constant 0 : index
      %c0_85 = arith.constant 0 : index
      %c0_86 = arith.constant 0 : index
      %97 = vector.load %arg9[%c0_84, %c0_85, %c0_86] : memref<2x8x1xf32, #tpu.memory_space<vmem>>, vector<2x8x1xf32>
      tpu.vector_store %arg9[%c0_84, %c0_85, %c0_86], %96 {strides = array<i32>} : memref<2x8x1xf32, #tpu.memory_space<vmem>>, vector<2x8x1xf32>,
      %cst_87 = arith.constant 0.000000e+00 : f32
      %98 = vector.broadcast %cst_87 : f32 to vector<2x8x16xf32>
      %c0_88 = arith.constant 0 : index
      %c0_89 = arith.constant 0 : index
      %c0_90 = arith.constant 0 : index
      %99 = vector.load %arg10[%c0_88, %c0_89, %c0_90] : memref<2x8x16xf32, #tpu.memory_space<vmem>>, vector<2x8x16xf32>
      tpu.vector_store %arg10[%c0_88, %c0_89, %c0_90], %98 {strides = array<i32>} : memref<2x8x16xf32, #tpu.memory_space<vmem>>, vector<2x8x16xf32>,
    } else {
    }
    %c0 = arith.constant 0 : index
    %c0_1 = arith.constant 0 : index
    %c0_2 = arith.constant 0 : index
    %3 = vector.load %arg6[%c0, %c0_1, %c0_2] : memref<1x1x8xf32, #tpu.memory_space<vmem>>, vector<1x1x8xf32>
    %4 = vector.shape_cast %3 : vector<1x1x8xf32> to vector<1x8xf32>
    %c0_3 = arith.constant 0 : index
    %c0_4 = arith.constant 0 : index
    %c0_5 = arith.constant 0 : index
    %c0_6 = arith.constant 0 : index
    %c0_7 = arith.constant 0 : index
    %5 = vector.load %arg3[%c0_3, %c0_4, %c0_5, %c0_6, %c0_7] : memref<1x8x1x2x16xbf16, #tpu.memory_space<vmem>>, vector<1x8x1x1x16xbf16>
    %6 = vector.shape_cast %5 : vector<1x8x1x1x16xbf16> to vector<8x16xbf16>
    %c0_8 = arith.constant 0 : index
    %c0_9 = arith.constant 0 : index
    %c0_10 = arith.constant 0 : index
    %c0_11 = arith.constant 0 : index
    %c0_12 = arith.constant 0 : index
    %7 = vector.load %arg4[%c0_8, %c0_9, %c0_10, %c0_11, %c0_12] : memref<1x8x1x2x16xbf16, #tpu.memory_space<vmem>>, vector<1x8x1x1x16xbf16>
    %8 = vector.shape_cast %7 : vector<1x8x1x1x16xbf16> to vector<8x16xbf16>
    %c0_13 = arith.constant 0 : index
    %c0_14 = arith.constant 0 : index
    %c0_15 = arith.constant 0 : index
    %c0_16 = arith.constant 0 : index
    %c0_17 = arith.constant 0 : index
    %9 = vector.load %arg5[%c0_13, %c0_14, %c0_15, %c0_16, %c0_17] : memref<1x8x1x2x16xbf16, #tpu.memory_space<vmem>>, vector<1x8x1x1x16xbf16>
    %10 = vector.shape_cast %9 : vector<1x8x1x1x16xbf16> to vector<8x16xbf16>
    %cst = arith.constant dense<0.000000e+00> : vector<8x8xf32>
    %11 = tpu.matmul %6, %8, %cst {dimension_numbers = #tpu.dot_dimension_numbers<[1], [1], [0], [0], [0, 0, 1, 0], [], []>} : vector<8x16xbf16>, vector<8x16xbf16>, vector<8x8xf32> -> vector<8x8xf32>
    %cst_18 = arith.constant 2.500000e-01 : f32
    %12 = vector.broadcast %cst_18 : f32 to vector<8x8xf32>
    %13 = arith.mulf %11, %12 : vector<8x8xf32>
    %14 = vector.broadcast %4 : vector<1x8xf32> to vector<8x8xf32>
    %15 = arith.addf %13, %14 : vector<8x8xf32>
    %c0_19 = arith.constant 0 : index
    %c0_20 = arith.constant 0 : index
    %c0_21 = arith.constant 0 : index
    %16 = vector.load %arg8[%c0_19, %c0_20, %c0_21] : memref<2x8x1xf32, #tpu.memory_space<vmem>>, vector<1x8x1xf32>
    %17 = vector.shape_cast %16 : vector<1x8x1xf32> to vector<8x1xf32>
    %cst_22 = arith.constant dense<0xFF800000> : vector<8xf32>
    %18 = vector.multi_reduction <maximumf>, %15, %cst_22 [1] : vector<8x8xf32> to vector<8xf32>
    %19 = vector.shape_cast %18 : vector<8xf32> to vector<8x1xf32>
    %20 = arith.maximumf %17, %19 : vector<8x1xf32>
    %21 = arith.subf %17, %20 : vector<8x1xf32>
    %22 = math.exp %21 : vector<8x1xf32>
    %23 = vector.broadcast %20 : vector<8x1xf32> to vector<8x8xf32>
    %24 = arith.subf %15, %23 : vector<8x8xf32>
    %25 = math.exp %24 : vector<8x8xf32>
    %c0_23 = arith.constant 0 : index
    %c0_24 = arith.constant 0 : index
    %c0_25 = arith.constant 0 : index
    %26 = vector.load %arg9[%c0_23, %c0_24, %c0_25] : memref<2x8x1xf32, #tpu.memory_space<vmem>>, vector<1x8x1xf32>
    %27 = vector.shape_cast %26 : vector<1x8x1xf32> to vector<8x1xf32>
    %28 = arith.mulf %22, %27 : vector<8x1xf32>
    %cst_26 = arith.constant dense<0.000000e+00> : vector<8xf32>
    %29 = vector.multi_reduction <add>, %25, %cst_26 [1] : vector<8x8xf32> to vector<8xf32>
    %30 = vector.shape_cast %29 : vector<8xf32> to vector<8x1xf32>
    %31 = arith.addf %28, %30 : vector<8x1xf32>
    %c0_27 = arith.constant 0 : index
    %c0_28 = arith.constant 0 : index
    %c0_29 = arith.constant 0 : index
    %32 = vector.load %arg9[%c0_27, %c0_28, %c0_29] : memref<2x8x1xf32, #tpu.memory_space<vmem>>, vector<1x8x1xf32>
    %33 = vector.shape_cast %32 : vector<1x8x1xf32> to vector<8x1xf32>
    %34 = vector.shape_cast %31 : vector<8x1xf32> to vector<1x8x1xf32>
    tpu.vector_store %arg9[%c0_27, %c0_28, %c0_29], %34 {strides = array<i32>} : memref<2x8x1xf32, #tpu.memory_space<vmem>>, vector<1x8x1xf32>,
    %c0_30 = arith.constant 0 : index
    %c0_31 = arith.constant 0 : index
    %c0_32 = arith.constant 0 : index
    %35 = vector.load %arg10[%c0_30, %c0_31, %c0_32] : memref<2x8x16xf32, #tpu.memory_space<vmem>>, vector<1x8x16xf32>
    %36 = vector.shape_cast %35 : vector<1x8x16xf32> to vector<8x16xf32>
    %37 = vector.broadcast %22 : vector<8x1xf32> to vector<8x16xf32>
    %38 = arith.mulf %37, %36 : vector<8x16xf32>
    %39 = arith.truncf %25 : vector<8x8xf32> to vector<8x8xbf16>
    %cst_33 = arith.constant dense<0.000000e+00> : vector<8x16xf32>
    %40 = tpu.matmul %39, %10, %cst_33 {dimension_numbers = #tpu.dot_dimension_numbers<[1], [0], [0], [1], [0, 0, 1, 1], [], []>} : vector<8x8xbf16>, vector<8x16xbf16>, vector<8x16xf32> -> vector<8x16xf32>
    %41 = arith.addf %38, %40 : vector<8x16xf32>
    %c0_34 = arith.constant 0 : index
    %c0_35 = arith.constant 0 : index
    %c0_36 = arith.constant 0 : index
    %42 = vector.load %arg10[%c0_34, %c0_35, %c0_36] : memref<2x8x16xf32, #tpu.memory_space<vmem>>, vector<1x8x16xf32>
    %43 = vector.shape_cast %42 : vector<1x8x16xf32> to vector<8x16xf32>
    %44 = vector.shape_cast %41 : vector<8x16xf32> to vector<1x8x16xf32>
    tpu.vector_store %arg10[%c0_34, %c0_35, %c0_36], %44 {strides = array<i32>} : memref<2x8x16xf32, #tpu.memory_space<vmem>>, vector<1x8x16xf32>,
    %c0_37 = arith.constant 0 : index
    %c0_38 = arith.constant 0 : index
    %c0_39 = arith.constant 0 : index
    %45 = vector.load %arg8[%c0_37, %c0_38, %c0_39] : memref<2x8x1xf32, #tpu.memory_space<vmem>>, vector<1x8x1xf32>
    %46 = vector.shape_cast %45 : vector<1x8x1xf32> to vector<8x1xf32>
    %47 = vector.shape_cast %20 : vector<8x1xf32> to vector<1x8x1xf32>
    tpu.vector_store %arg8[%c0_37, %c0_38, %c0_39], %47 {strides = array<i32>} : memref<2x8x1xf32, #tpu.memory_space<vmem>>, vector<1x8x1xf32>,
    %c0_40 = arith.constant 0 : index
    %c0_41 = arith.constant 0 : index
    %c0_42 = arith.constant 0 : index
    %c1 = arith.constant 1 : index
    %c0_43 = arith.constant 0 : index
    %48 = vector.load %arg3[%c0_40, %c0_41, %c0_42, %c1, %c0_43] : memref<1x8x1x2x16xbf16, #tpu.memory_space<vmem>>, vector<1x8x1x1x16xbf16>
    %49 = vector.shape_cast %48 : vector<1x8x1x1x16xbf16> to vector<8x16xbf16>
    %c0_44 = arith.constant 0 : index
    %c0_45 = arith.constant 0 : index
    %c0_46 = arith.constant 0 : index
    %c1_47 = arith.constant 1 : index
    %c0_48 = arith.constant 0 : index
    %50 = vector.load %arg4[%c0_44, %c0_45, %c0_46, %c1_47, %c0_48] : memref<1x8x1x2x16xbf16, #tpu.memory_space<vmem>>, vector<1x8x1x1x16xbf16>
    %51 = vector.shape_cast %50 : vector<1x8x1x1x16xbf16> to vector<8x16xbf16>
    %c0_49 = arith.constant 0 : index
    %c0_50 = arith.constant 0 : index
    %c0_51 = arith.constant 0 : index
    %c1_52 = arith.constant 1 : index
    %c0_53 = arith.constant 0 : index
    %52 = vector.load %arg5[%c0_49, %c0_50, %c0_51, %c1_52, %c0_53] : memref<1x8x1x2x16xbf16, #tpu.memory_space<vmem>>, vector<1x8x1x1x16xbf16>
    %53 = vector.shape_cast %52 : vector<1x8x1x1x16xbf16> to vector<8x16xbf16>
    %cst_54 = arith.constant dense<0.000000e+00> : vector<8x8xf32>
    %54 = tpu.matmul %49, %51, %cst_54 {dimension_numbers = #tpu.dot_dimension_numbers<[1], [1], [0], [0], [0, 0, 1, 0], [], []>} : vector<8x16xbf16>, vector<8x16xbf16>, vector<8x8xf32> -> vector<8x8xf32>
    %cst_55 = arith.constant 2.500000e-01 : f32
    %55 = vector.broadcast %cst_55 : f32 to vector<8x8xf32>
    %56 = arith.mulf %54, %55 : vector<8x8xf32>
    %57 = vector.broadcast %4 : vector<1x8xf32> to vector<8x8xf32>
    %58 = arith.addf %56, %57 : vector<8x8xf32>
    %c1_56 = arith.constant 1 : index
    %c0_57 = arith.constant 0 : index
    %c0_58 = arith.constant 0 : index
    %59 = vector.load %arg8[%c1_56, %c0_57, %c0_58] : memref<2x8x1xf32, #tpu.memory_space<vmem>>, vector<1x8x1xf32>
    %60 = vector.shape_cast %59 : vector<1x8x1xf32> to vector<8x1xf32>
    %cst_59 = arith.constant dense<0xFF800000> : vector<8xf32>
    %61 = vector.multi_reduction <maximumf>, %58, %cst_59 [1] : vector<8x8xf32> to vector<8xf32>
    %62 = vector.shape_cast %61 : vector<8xf32> to vector<8x1xf32>
    %63 = arith.maximumf %60, %62 : vector<8x1xf32>
    %64 = arith.subf %60, %63 : vector<8x1xf32>
    %65 = math.exp %64 : vector<8x1xf32>
    %66 = vector.broadcast %63 : vector<8x1xf32> to vector<8x8xf32>
    %67 = arith.subf %58, %66 : vector<8x8xf32>
    %68 = math.exp %67 : vector<8x8xf32>
    %c1_60 = arith.constant 1 : index
    %c0_61 = arith.constant 0 : index
    %c0_62 = arith.constant 0 : index
    %69 = vector.load %arg9[%c1_60, %c0_61, %c0_62] : memref<2x8x1xf32, #tpu.memory_space<vmem>>, vector<1x8x1xf32>
    %70 = vector.shape_cast %69 : vector<1x8x1xf32> to vector<8x1xf32>
    %71 = arith.mulf %65, %70 : vector<8x1xf32>
    %cst_63 = arith.constant dense<0.000000e+00> : vector<8xf32>
    %72 = vector.multi_reduction <add>, %68, %cst_63 [1] : vector<8x8xf32> to vector<8xf32>
    %73 = vector.shape_cast %72 : vector<8xf32> to vector<8x1xf32>
    %74 = arith.addf %71, %73 : vector<8x1xf32>
    %c1_64 = arith.constant 1 : index
    %c0_65 = arith.constant 0 : index
    %c0_66 = arith.constant 0 : index
    %75 = vector.load %arg9[%c1_64, %c0_65, %c0_66] : memref<2x8x1xf32, #tpu.memory_space<vmem>>, vector<1x8x1xf32>
    %76 = vector.shape_cast %75 : vector<1x8x1xf32> to vector<8x1xf32>
    %77 = vector.shape_cast %74 : vector<8x1xf32> to vector<1x8x1xf32>
    tpu.vector_store %arg9[%c1_64, %c0_65, %c0_66], %77 {strides = array<i32>} : memref<2x8x1xf32, #tpu.memory_space<vmem>>, vector<1x8x1xf32>,
    %c1_67 = arith.constant 1 : index
    %c0_68 = arith.constant 0 : index
    %c0_69 = arith.constant 0 : index
    %78 = vector.load %arg10[%c1_67, %c0_68, %c0_69] : memref<2x8x16xf32, #tpu.memory_space<vmem>>, vector<1x8x16xf32>
    %79 = vector.shape_cast %78 : vector<1x8x16xf32> to vector<8x16xf32>
    %80 = vector.broadcast %65 : vector<8x1xf32> to vector<8x16xf32>
    %81 = arith.mulf %80, %79 : vector<8x16xf32>
    %82 = arith.truncf %68 : vector<8x8xf32> to vector<8x8xbf16>
    %cst_70 = arith.constant dense<0.000000e+00> : vector<8x16xf32>
    %83 = tpu.matmul %82, %53, %cst_70 {dimension_numbers = #tpu.dot_dimension_numbers<[1], [0], [0], [1], [0, 0, 1, 1], [], []>} : vector<8x8xbf16>, vector<8x16xbf16>, vector<8x16xf32> -> vector<8x16xf32>
    %84 = arith.addf %81, %83 : vector<8x16xf32>
    %c1_71 = arith.constant 1 : index
    %c0_72 = arith.constant 0 : index
    %c0_73 = arith.constant 0 : index
    %85 = vector.load %arg10[%c1_71, %c0_72, %c0_73] : memref<2x8x16xf32, #tpu.memory_space<vmem>>, vector<1x8x16xf32>
    %86 = vector.shape_cast %85 : vector<1x8x16xf32> to vector<8x16xf32>
    %87 = vector.shape_cast %84 : vector<8x16xf32> to vector<1x8x16xf32>
    tpu.vector_store %arg10[%c1_71, %c0_72, %c0_73], %87 {strides = array<i32>} : memref<2x8x16xf32, #tpu.memory_space<vmem>>, vector<1x8x16xf32>,
    %c1_74 = arith.constant 1 : index
    %c0_75 = arith.constant 0 : index
    %c0_76 = arith.constant 0 : index
    %88 = vector.load %arg8[%c1_74, %c0_75, %c0_76] : memref<2x8x1xf32, #tpu.memory_space<vmem>>, vector<1x8x1xf32>
    %89 = vector.shape_cast %88 : vector<1x8x1xf32> to vector<8x1xf32>
    %90 = vector.shape_cast %63 : vector<8x1xf32> to vector<1x8x1xf32>
    tpu.vector_store %arg8[%c1_74, %c0_75, %c0_76], %90 {strides = array<i32>} : memref<2x8x1xf32, #tpu.memory_space<vmem>>, vector<1x8x1xf32>,
    %c0_i32_77 = arith.constant 0 : i32
    %91 = arith.cmpi eq, %arg2, %c0_i32_77 : i32
    %92 = arith.extui %91 : i1 to i32
    %c0_i32_78 = arith.constant 0 : i32
    %93 = arith.cmpi ne, %92, %c0_i32_78 : i32
    scf.if %93 {
      %c0_79 = arith.constant 0 : index
      %c0_80 = arith.constant 0 : index
      %c0_81 = arith.constant 0 : index
      %94 = vector.load %arg10[%c0_79, %c0_80, %c0_81] : memref<2x8x16xf32, #tpu.memory_space<vmem>>, vector<1x8x16xf32>
      %95 = vector.shape_cast %94 : vector<1x8x16xf32> to vector<8x16xf32>
      %c0_82 = arith.constant 0 : index
      %c0_83 = arith.constant 0 : index
      %c0_84 = arith.constant 0 : index
      %96 = vector.load %arg9[%c0_82, %c0_83, %c0_84] : memref<2x8x1xf32, #tpu.memory_space<vmem>>, vector<1x8x1xf32>
      %97 = vector.shape_cast %96 : vector<1x8x1xf32> to vector<8x1xf32>
      %98 = tpu.reciprocal %97 {approx = true} : vector<8x1xf32> -> vector<8x1xf32>
      %99 = vector.broadcast %98 : vector<8x1xf32> to vector<8x16xf32>
      %100 = arith.mulf %95, %99 : vector<8x16xf32>
      %c1_85 = arith.constant 1 : index
      %c0_86 = arith.constant 0 : index
      %c0_87 = arith.constant 0 : index
      %101 = vector.load %arg10[%c1_85, %c0_86, %c0_87] : memref<2x8x16xf32, #tpu.memory_space<vmem>>, vector<1x8x16xf32>
      %102 = vector.shape_cast %101 : vector<1x8x16xf32> to vector<8x16xf32>
      %c1_88 = arith.constant 1 : index
      %c0_89 = arith.constant 0 : index
      %c0_90 = arith.constant 0 : index
      %103 = vector.load %arg9[%c1_88, %c0_89, %c0_90] : memref<2x8x1xf32, #tpu.memory_space<vmem>>, vector<1x8x1xf32>
      %104 = vector.shape_cast %103 : vector<1x8x1xf32> to vector<8x1xf32>
      %105 = tpu.reciprocal %104 {approx = true} : vector<8x1xf32> -> vector<8x1xf32>
      %106 = vector.broadcast %105 : vector<8x1xf32> to vector<8x16xf32>
      %107 = arith.mulf %102, %106 : vector<8x16xf32>
      %108 = tpu.concatenate %100, %107 in 1 : vector<8x16xf32>, vector<8x16xf32> -> vector<8x32xf32>
      %109 = arith.truncf %108 : vector<8x32xf32> to vector<8x32xbf16>
      %c0_91 = arith.constant 0 : index
      %c0_92 = arith.constant 0 : index
      %c0_93 = arith.constant 0 : index
      %110 = vector.load %arg7[%c0_91, %c0_92, %c0_93] : memref<1x8x32xbf16, #tpu.memory_space<vmem>>, vector<1x8x32xbf16>
      %111 = vector.shape_cast %110 : vector<1x8x32xbf16> to vector<8x32xbf16>
      %112 = vector.shape_cast %109 : vector<8x32xbf16> to vector<1x8x32xbf16>
      tpu.vector_store %arg7[%c0_91, %c0_92, %c0_93], %112 {strides = array<i32>} : memref<1x8x32xbf16, #tpu.memory_space<vmem>>, vector<1x8x32xbf16>,
    } else {
    }
    return
  }
  func.func @transform_0(%arg0: i32, %arg1: i32, %arg2: i32) -> (i32, i32, i32, i32, i32) {
    %c0_i32 = arith.constant 0 : i32
    %c0_i32_0 = arith.constant 0 : i32
    %c0_i32_1 = arith.constant 0 : i32
    %c0_i32_2 = arith.constant 0 : i32
    return %arg0, %arg1, %c0_i32, %c0_i32_0, %c0_i32_1 : i32, i32, i32, i32, i32
  }
  func.func @transform_1(%arg0: i32, %arg1: i32, %arg2: i32) -> (i32, i32, i32, i32, i32) {
    %c1_i32 = arith.constant 1 : i32
    %c0_i32 = arith.constant 0 : i32
    %c0_i32_0 = arith.constant 0 : i32
    %c0_i32_1 = arith.constant 0 : i32
    return %arg0, %arg2, %c1_i32, %c0_i32, %c0_i32_0 : i32, i32, i32, i32, i32
  }
  func.func @transform_2(%arg0: i32, %arg1: i32, %arg2: i32) -> (i32, i32, i32, i32, i32) {
    %c2_i32 = arith.constant 2 : i32
    %c0_i32 = arith.constant 0 : i32
    %c0_i32_0 = arith.constant 0 : i32
    %c0_i32_1 = arith.constant 0 : i32
    return %arg0, %arg2, %c2_i32, %c0_i32, %c0_i32_0 : i32, i32, i32, i32, i32
  }
  func.func @transform_3(%arg0: i32, %arg1: i32, %arg2: i32) -> (i32, i32, i32) {
    %c0_i32 = arith.constant 0 : i32
    %c0_i32_0 = arith.constant 0 : i32
    return %arg0, %c0_i32, %arg2 : i32, i32, i32
  }
  func.func @transform_4(%arg0: i32, %arg1: i32, %arg2: i32) -> (i32, i32, i32) {
    %c0_i32 = arith.constant 0 : i32
    %c0_i32_0 = arith.constant 0 : i32
    return %arg0, %arg1, %c0_i32 : i32, i32, i32
  }
}

module attributes {stable_mosaic.version = 11 : i64} {
  func.func @_linear_res_ln_kernel(%arg0: i32, %arg1: i32, %arg2: memref<16x32xbf16, #tpu.memory_space<vmem>>, %arg3: memref<32x32xbf16, #tpu.memory_space<vmem>>, %arg4: memref<1x32xf32, #tpu.memory_space<vmem>>, %arg5: memref<16x32xbf16, #tpu.memory_space<vmem>>, %arg6: memref<1x32xf32, #tpu.memory_space<vmem>>, %arg7: memref<1x32xf32, #tpu.memory_space<vmem>>, %arg8: memref<16x32xbf16, #tpu.memory_space<vmem>>, %arg9: memref<16x32xf32, #tpu.memory_space<vmem>>) attributes {dimension_semantics = [#tpu.dimension_semantics<parallel>, #tpu.dimension_semantics<arbitrary>], iteration_bounds = array<i64: 1, 1>, scalar_prefetch = 0 : i64, scratch_operands = 1 : i64, tpu.core_type = #tpu.core_type<tc>, window_params = [{transform_indices = @transform_0, window_bounds = array<i64: 16, 32>}, {transform_indices = @transform_1, window_bounds = array<i64: 32, 32>}, {pipeline_mode = #tpu.pipeline_mode<synchronous>, transform_indices = @transform_2, window_bounds = array<i64: 1, 32>}, {transform_indices = @transform_3, window_bounds = array<i64: 16, 32>}, {pipeline_mode = #tpu.pipeline_mode<synchronous>, transform_indices = @transform_4, window_bounds = array<i64: 1, 32>}, {pipeline_mode = #tpu.pipeline_mode<synchronous>, transform_indices = @transform_5, window_bounds = array<i64: 1, 32>}, {transform_indices = @transform_6, window_bounds = array<i64: 16, 32>}]} {
    %c0_i32 = arith.constant 0 : i32
    %0 = arith.cmpi eq, %arg1, %c0_i32 : i32
    %1 = arith.extui %0 : i1 to i32
    %c0_i32_0 = arith.constant 0 : i32
    %2 = arith.cmpi ne, %1, %c0_i32_0 : i32
    scf.if %2 {
      %cst_10 = arith.constant 0.000000e+00 : f32
      %12 = vector.broadcast %cst_10 : f32 to vector<16x32xf32>
      %c0_11 = arith.constant 0 : index
      %c0_12 = arith.constant 0 : index
      %13 = vector.load %arg9[%c0_11, %c0_12] : memref<16x32xf32, #tpu.memory_space<vmem>>, vector<16x32xf32>
      tpu.vector_store %arg9[%c0_11, %c0_12], %12 {strides = array<i32>} : memref<16x32xf32, #tpu.memory_space<vmem>>, vector<16x32xf32>,
    } else {
    }
    %c0 = arith.constant 0 : index
    %c0_1 = arith.constant 0 : index
    %3 = vector.load %arg9[%c0, %c0_1] : memref<16x32xf32, #tpu.memory_space<vmem>>, vector<16x32xf32>
    %c0_2 = arith.constant 0 : index
    %c0_3 = arith.constant 0 : index
    %4 = vector.load %arg2[%c0_2, %c0_3] : memref<16x32xbf16, #tpu.memory_space<vmem>>, vector<16x32xbf16>
    %c0_4 = arith.constant 0 : index
    %c0_5 = arith.constant 0 : index
    %5 = vector.load %arg3[%c0_4, %c0_5] : memref<32x32xbf16, #tpu.memory_space<vmem>>, vector<32x32xbf16>
    %cst = arith.constant dense<0.000000e+00> : vector<16x32xf32>
    %6 = tpu.matmul %4, %5, %cst {dimension_numbers = #tpu.dot_dimension_numbers<[1], [0], [0], [1], [0, 0, 1, 1], [], []>} : vector<16x32xbf16>, vector<32x32xbf16>, vector<16x32xf32> -> vector<16x32xf32>
    %7 = arith.addf %3, %6 : vector<16x32xf32>
    %c0_6 = arith.constant 0 : index
    %c0_7 = arith.constant 0 : index
    %8 = vector.load %arg9[%c0_6, %c0_7] : memref<16x32xf32, #tpu.memory_space<vmem>>, vector<16x32xf32>
    tpu.vector_store %arg9[%c0_6, %c0_7], %7 {strides = array<i32>} : memref<16x32xf32, #tpu.memory_space<vmem>>, vector<16x32xf32>,
    %c0_i32_8 = arith.constant 0 : i32
    %9 = arith.cmpi eq, %arg1, %c0_i32_8 : i32
    %10 = arith.extui %9 : i1 to i32
    %c0_i32_9 = arith.constant 0 : i32
    %11 = arith.cmpi ne, %10, %c0_i32_9 : i32
    scf.if %11 {
      %c0_10 = arith.constant 0 : index
      %c0_11 = arith.constant 0 : index
      %12 = vector.load %arg9[%c0_10, %c0_11] : memref<16x32xf32, #tpu.memory_space<vmem>>, vector<16x32xf32>
      %c0_12 = arith.constant 0 : index
      %c0_13 = arith.constant 0 : index
      %13 = vector.load %arg4[%c0_12, %c0_13] : memref<1x32xf32, #tpu.memory_space<vmem>>, vector<1x32xf32>
      %14 = vector.broadcast %13 : vector<1x32xf32> to vector<16x32xf32>
      %15 = arith.addf %12, %14 : vector<16x32xf32>
      %c0_14 = arith.constant 0 : index
      %c0_15 = arith.constant 0 : index
      %16 = vector.load %arg5[%c0_14, %c0_15] : memref<16x32xbf16, #tpu.memory_space<vmem>>, vector<16x32xbf16>
      %17 = arith.extf %16 : vector<16x32xbf16> to vector<16x32xf32>
      %18 = arith.addf %15, %17 : vector<16x32xf32>
      %cst_16 = arith.constant dense<0.000000e+00> : vector<16xf32>
      %19 = vector.multi_reduction <add>, %18, %cst_16 [1] : vector<16x32xf32> to vector<16xf32>
      %20 = vector.shape_cast %19 : vector<16xf32> to vector<16x1xf32>
      %cst_17 = arith.constant 3.200000e+01 : f32
      %21 = vector.broadcast %cst_17 : f32 to vector<16x1xf32>
      %22 = arith.divf %20, %21 : vector<16x1xf32>
      %23 = vector.broadcast %22 : vector<16x1xf32> to vector<16x32xf32>
      %24 = arith.subf %18, %23 : vector<16x32xf32>
      %25 = arith.mulf %24, %24 : vector<16x32xf32>
      %cst_18 = arith.constant dense<0.000000e+00> : vector<16xf32>
      %26 = vector.multi_reduction <add>, %25, %cst_18 [1] : vector<16x32xf32> to vector<16xf32>
      %27 = vector.shape_cast %26 : vector<16xf32> to vector<16x1xf32>
      %cst_19 = arith.constant 3.200000e+01 : f32
      %28 = vector.broadcast %cst_19 : f32 to vector<16x1xf32>
      %29 = arith.divf %27, %28 : vector<16x1xf32>
      %30 = vector.broadcast %22 : vector<16x1xf32> to vector<16x32xf32>
      %31 = arith.subf %18, %30 : vector<16x32xf32>
      %cst_20 = arith.constant 9.99999996E-13 : f32
      %32 = vector.broadcast %cst_20 : f32 to vector<16x1xf32>
      %33 = arith.addf %29, %32 : vector<16x1xf32>
      %34 = math.rsqrt %33 : vector<16x1xf32>
      %35 = vector.broadcast %34 : vector<16x1xf32> to vector<16x32xf32>
      %36 = arith.mulf %31, %35 : vector<16x32xf32>
      %c0_21 = arith.constant 0 : index
      %c0_22 = arith.constant 0 : index
      %37 = vector.load %arg6[%c0_21, %c0_22] : memref<1x32xf32, #tpu.memory_space<vmem>>, vector<1x32xf32>
      %38 = vector.broadcast %37 : vector<1x32xf32> to vector<16x32xf32>
      %39 = arith.mulf %36, %38 : vector<16x32xf32>
      %c0_23 = arith.constant 0 : index
      %c0_24 = arith.constant 0 : index
      %40 = vector.load %arg7[%c0_23, %c0_24] : memref<1x32xf32, #tpu.memory_space<vmem>>, vector<1x32xf32>
      %41 = vector.broadcast %40 : vector<1x32xf32> to vector<16x32xf32>
      %42 = arith.addf %39, %41 : vector<16x32xf32>
      %43 = arith.truncf %42 : vector<16x32xf32> to vector<16x32xbf16>
      %c0_25 = arith.constant 0 : index
      %c0_26 = arith.constant 0 : index
      %44 = vector.load %arg8[%c0_25, %c0_26] : memref<16x32xbf16, #tpu.memory_space<vmem>>, vector<16x32xbf16>
      tpu.vector_store %arg8[%c0_25, %c0_26], %43 {strides = array<i32>} : memref<16x32xbf16, #tpu.memory_space<vmem>>, vector<16x32xbf16>,
    } else {
    }
    return
  }
  func.func @transform_0(%arg0: i32, %arg1: i32) -> (i32, i32) {
    %c0_i32 = arith.constant 0 : i32
    return %arg0, %arg1 : i32, i32
  }
  func.func @transform_1(%arg0: i32, %arg1: i32) -> (i32, i32) {
    %c0_i32 = arith.constant 0 : i32
    %c0_i32_0 = arith.constant 0 : i32
    return %arg1, %c0_i32 : i32, i32
  }
  func.func @transform_2(%arg0: i32, %arg1: i32) -> (i32, i32) {
    %c0_i32 = arith.constant 0 : i32
    %c0_i32_0 = arith.constant 0 : i32
    %c0_i32_1 = arith.constant 0 : i32
    return %c0_i32, %c0_i32_0 : i32, i32
  }
  func.func @transform_3(%arg0: i32, %arg1: i32) -> (i32, i32) {
    %c0_i32 = arith.constant 0 : i32
    %c0_i32_0 = arith.constant 0 : i32
    return %arg0, %c0_i32 : i32, i32
  }
  func.func @transform_4(%arg0: i32, %arg1: i32) -> (i32, i32) {
    %c0_i32 = arith.constant 0 : i32
    %c0_i32_0 = arith.constant 0 : i32
    %c0_i32_1 = arith.constant 0 : i32
    return %c0_i32, %c0_i32_0 : i32, i32
  }
  func.func @transform_5(%arg0: i32, %arg1: i32) -> (i32, i32) {
    %c0_i32 = arith.constant 0 : i32
    %c0_i32_0 = arith.constant 0 : i32
    %c0_i32_1 = arith.constant 0 : i32
    return %c0_i32, %c0_i32_0 : i32, i32
  }
  func.func @transform_6(%arg0: i32, %arg1: i32) -> (i32, i32) {
    %c0_i32 = arith.constant 0 : i32
    %c0_i32_0 = arith.constant 0 : i32
    return %arg0, %c0_i32 : i32, i32
  }
}

module attributes {stable_mosaic.version = 11 : i64} {
  func.func @_linear_kernel_fullk(%arg0: i32, %arg1: i32, %arg2: memref<16x32xbf16, #tpu.memory_space<vmem>>, %arg3: memref<32x64xbf16, #tpu.memory_space<vmem>>, %arg4: memref<1x64xf32, #tpu.memory_space<vmem>>, %arg5: memref<16x64xbf16, #tpu.memory_space<vmem>>) attributes {dimension_semantics = [#tpu.dimension_semantics<parallel>, #tpu.dimension_semantics<parallel>], iteration_bounds = array<i64: 1, 1>, scalar_prefetch = 0 : i64, scratch_operands = 0 : i64, tpu.core_type = #tpu.core_type<tc>, window_params = [{transform_indices = @transform_0, window_bounds = array<i64: 16, 32>}, {transform_indices = @transform_1, window_bounds = array<i64: 32, 64>}, {transform_indices = @transform_2, window_bounds = array<i64: 1, 64>}, {transform_indices = @transform_3, window_bounds = array<i64: 16, 64>}]} {
    %c0 = arith.constant 0 : index
    %c0_0 = arith.constant 0 : index
    %0 = vector.load %arg2[%c0, %c0_0] : memref<16x32xbf16, #tpu.memory_space<vmem>>, vector<16x32xbf16>
    %c0_1 = arith.constant 0 : index
    %c0_2 = arith.constant 0 : index
    %1 = vector.load %arg3[%c0_1, %c0_2] : memref<32x64xbf16, #tpu.memory_space<vmem>>, vector<32x64xbf16>
    %cst = arith.constant dense<0.000000e+00> : vector<16x64xf32>
    %2 = tpu.matmul %0, %1, %cst {dimension_numbers = #tpu.dot_dimension_numbers<[1], [0], [0], [1], [0, 0, 1, 1], [], []>} : vector<16x32xbf16>, vector<32x64xbf16>, vector<16x64xf32> -> vector<16x64xf32>
    %c0_3 = arith.constant 0 : index
    %c0_4 = arith.constant 0 : index
    %3 = vector.load %arg4[%c0_3, %c0_4] : memref<1x64xf32, #tpu.memory_space<vmem>>, vector<1x64xf32>
    %4 = vector.broadcast %3 : vector<1x64xf32> to vector<16x64xf32>
    %5 = arith.addf %2, %4 : vector<16x64xf32>
    %cst_5 = arith.constant 5.000000e-01 : f32
    %6 = vector.broadcast %cst_5 : f32 to vector<16x64xf32>
    %7 = arith.mulf %6, %5 : vector<16x64xf32>
    %cst_6 = arith.constant 4.471500e-02 : f32
    %8 = vector.broadcast %cst_6 : f32 to vector<16x64xf32>
    %9 = arith.mulf %8, %5 : vector<16x64xf32>
    %10 = arith.mulf %9, %5 : vector<16x64xf32>
    %11 = arith.mulf %10, %5 : vector<16x64xf32>
    %12 = arith.addf %5, %11 : vector<16x64xf32>
    %cst_7 = arith.constant 0.797884583 : f32
    %13 = vector.broadcast %cst_7 : f32 to vector<16x64xf32>
    %14 = arith.mulf %13, %12 : vector<16x64xf32>
    %15 = math.tanh %14 : vector<16x64xf32>
    %cst_8 = arith.constant 1.000000e+00 : f32
    %16 = vector.broadcast %cst_8 : f32 to vector<16x64xf32>
    %17 = arith.addf %16, %15 : vector<16x64xf32>
    %18 = arith.mulf %7, %17 : vector<16x64xf32>
    %19 = arith.truncf %18 : vector<16x64xf32> to vector<16x64xbf16>
    %c0_9 = arith.constant 0 : index
    %c0_10 = arith.constant 0 : index
    %20 = vector.load %arg5[%c0_9, %c0_10] : memref<16x64xbf16, #tpu.memory_space<vmem>>, vector<16x64xbf16>
    tpu.vector_store %arg5[%c0_9, %c0_10], %19 {strides = array<i32>} : memref<16x64xbf16, #tpu.memory_space<vmem>>, vector<16x64xbf16>,
    return
  }
  func.func @transform_0(%arg0: i32, %arg1: i32) -> (i32, i32) {
    %c0_i32 = arith.constant 0 : i32
    %c0_i32_0 = arith.constant 0 : i32
    return %arg0, %c0_i32 : i32, i32
  }
  func.func @transform_1(%arg0: i32, %arg1: i32) -> (i32, i32) {
    %c0_i32 = arith.constant 0 : i32
    %c0_i32_0 = arith.constant 0 : i32
    return %c0_i32, %arg1 : i32, i32
  }
  func.func @transform_2(%arg0: i32, %arg1: i32) -> (i32, i32) {
    %c0_i32 = arith.constant 0 : i32
    %c0_i32_0 = arith.constant 0 : i32
    return %c0_i32, %arg1 : i32, i32
  }
  func.func @transform_3(%arg0: i32, %arg1: i32) -> (i32, i32) {
    %c0_i32 = arith.constant 0 : i32
    return %arg0, %arg1 : i32, i32
  }
}

module attributes {stable_mosaic.version = 11 : i64} {
  func.func @_linear_res_ln_kernel(%arg0: i32, %arg1: i32, %arg2: memref<16x64xbf16, #tpu.memory_space<vmem>>, %arg3: memref<64x32xbf16, #tpu.memory_space<vmem>>, %arg4: memref<1x32xf32, #tpu.memory_space<vmem>>, %arg5: memref<16x32xbf16, #tpu.memory_space<vmem>>, %arg6: memref<1x32xf32, #tpu.memory_space<vmem>>, %arg7: memref<1x32xf32, #tpu.memory_space<vmem>>, %arg8: memref<16x32xbf16, #tpu.memory_space<vmem>>, %arg9: memref<16x32xf32, #tpu.memory_space<vmem>>) attributes {dimension_semantics = [#tpu.dimension_semantics<parallel>, #tpu.dimension_semantics<arbitrary>], iteration_bounds = array<i64: 1, 1>, scalar_prefetch = 0 : i64, scratch_operands = 1 : i64, tpu.core_type = #tpu.core_type<tc>, window_params = [{transform_indices = @transform_0, window_bounds = array<i64: 16, 64>}, {transform_indices = @transform_1, window_bounds = array<i64: 64, 32>}, {pipeline_mode = #tpu.pipeline_mode<synchronous>, transform_indices = @transform_2, window_bounds = array<i64: 1, 32>}, {transform_indices = @transform_3, window_bounds = array<i64: 16, 32>}, {pipeline_mode = #tpu.pipeline_mode<synchronous>, transform_indices = @transform_4, window_bounds = array<i64: 1, 32>}, {pipeline_mode = #tpu.pipeline_mode<synchronous>, transform_indices = @transform_5, window_bounds = array<i64: 1, 32>}, {transform_indices = @transform_6, window_bounds = array<i64: 16, 32>}]} {
    %c0_i32 = arith.constant 0 : i32
    %0 = arith.cmpi eq, %arg1, %c0_i32 : i32
    %1 = arith.extui %0 : i1 to i32
    %c0_i32_0 = arith.constant 0 : i32
    %2 = arith.cmpi ne, %1, %c0_i32_0 : i32
    scf.if %2 {
      %cst_10 = arith.constant 0.000000e+00 : f32
      %12 = vector.broadcast %cst_10 : f32 to vector<16x32xf32>
      %c0_11 = arith.constant 0 : index
      %c0_12 = arith.constant 0 : index
      %13 = vector.load %arg9[%c0_11, %c0_12] : memref<16x32xf32, #tpu.memory_space<vmem>>, vector<16x32xf32>
      tpu.vector_store %arg9[%c0_11, %c0_12], %12 {strides = array<i32>} : memref<16x32xf32, #tpu.memory_space<vmem>>, vector<16x32xf32>,
    } else {
    }
    %c0 = arith.constant 0 : index
    %c0_1 = arith.constant 0 : index
    %3 = vector.load %arg9[%c0, %c0_1] : memref<16x32xf32, #tpu.memory_space<vmem>>, vector<16x32xf32>
    %c0_2 = arith.constant 0 : index
    %c0_3 = arith.constant 0 : index
    %4 = vector.load %arg2[%c0_2, %c0_3] : memref<16x64xbf16, #tpu.memory_space<vmem>>, vector<16x64xbf16>
    %c0_4 = arith.constant 0 : index
    %c0_5 = arith.constant 0 : index
    %5 = vector.load %arg3[%c0_4, %c0_5] : memref<64x32xbf16, #tpu.memory_space<vmem>>, vector<64x32xbf16>
    %cst = arith.constant dense<0.000000e+00> : vector<16x32xf32>
    %6 = tpu.matmul %4, %5, %cst {dimension_numbers = #tpu.dot_dimension_numbers<[1], [0], [0], [1], [0, 0, 1, 1], [], []>} : vector<16x64xbf16>, vector<64x32xbf16>, vector<16x32xf32> -> vector<16x32xf32>
    %7 = arith.addf %3, %6 : vector<16x32xf32>
    %c0_6 = arith.constant 0 : index
    %c0_7 = arith.constant 0 : index
    %8 = vector.load %arg9[%c0_6, %c0_7] : memref<16x32xf32, #tpu.memory_space<vmem>>, vector<16x32xf32>
    tpu.vector_store %arg9[%c0_6, %c0_7], %7 {strides = array<i32>} : memref<16x32xf32, #tpu.memory_space<vmem>>, vector<16x32xf32>,
    %c0_i32_8 = arith.constant 0 : i32
    %9 = arith.cmpi eq, %arg1, %c0_i32_8 : i32
    %10 = arith.extui %9 : i1 to i32
    %c0_i32_9 = arith.constant 0 : i32
    %11 = arith.cmpi ne, %10, %c0_i32_9 : i32
    scf.if %11 {
      %c0_10 = arith.constant 0 : index
      %c0_11 = arith.constant 0 : index
      %12 = vector.load %arg9[%c0_10, %c0_11] : memref<16x32xf32, #tpu.memory_space<vmem>>, vector<16x32xf32>
      %c0_12 = arith.constant 0 : index
      %c0_13 = arith.constant 0 : index
      %13 = vector.load %arg4[%c0_12, %c0_13] : memref<1x32xf32, #tpu.memory_space<vmem>>, vector<1x32xf32>
      %14 = vector.broadcast %13 : vector<1x32xf32> to vector<16x32xf32>
      %15 = arith.addf %12, %14 : vector<16x32xf32>
      %c0_14 = arith.constant 0 : index
      %c0_15 = arith.constant 0 : index
      %16 = vector.load %arg5[%c0_14, %c0_15] : memref<16x32xbf16, #tpu.memory_space<vmem>>, vector<16x32xbf16>
      %17 = arith.extf %16 : vector<16x32xbf16> to vector<16x32xf32>
      %18 = arith.addf %15, %17 : vector<16x32xf32>
      %cst_16 = arith.constant dense<0.000000e+00> : vector<16xf32>
      %19 = vector.multi_reduction <add>, %18, %cst_16 [1] : vector<16x32xf32> to vector<16xf32>
      %20 = vector.shape_cast %19 : vector<16xf32> to vector<16x1xf32>
      %cst_17 = arith.constant 3.200000e+01 : f32
      %21 = vector.broadcast %cst_17 : f32 to vector<16x1xf32>
      %22 = arith.divf %20, %21 : vector<16x1xf32>
      %23 = vector.broadcast %22 : vector<16x1xf32> to vector<16x32xf32>
      %24 = arith.subf %18, %23 : vector<16x32xf32>
      %25 = arith.mulf %24, %24 : vector<16x32xf32>
      %cst_18 = arith.constant dense<0.000000e+00> : vector<16xf32>
      %26 = vector.multi_reduction <add>, %25, %cst_18 [1] : vector<16x32xf32> to vector<16xf32>
      %27 = vector.shape_cast %26 : vector<16xf32> to vector<16x1xf32>
      %cst_19 = arith.constant 3.200000e+01 : f32
      %28 = vector.broadcast %cst_19 : f32 to vector<16x1xf32>
      %29 = arith.divf %27, %28 : vector<16x1xf32>
      %30 = vector.broadcast %22 : vector<16x1xf32> to vector<16x32xf32>
      %31 = arith.subf %18, %30 : vector<16x32xf32>
      %cst_20 = arith.constant 9.99999996E-13 : f32
      %32 = vector.broadcast %cst_20 : f32 to vector<16x1xf32>
      %33 = arith.addf %29, %32 : vector<16x1xf32>
      %34 = math.rsqrt %33 : vector<16x1xf32>
      %35 = vector.broadcast %34 : vector<16x1xf32> to vector<16x32xf32>
      %36 = arith.mulf %31, %35 : vector<16x32xf32>
      %c0_21 = arith.constant 0 : index
      %c0_22 = arith.constant 0 : index
      %37 = vector.load %arg6[%c0_21, %c0_22] : memref<1x32xf32, #tpu.memory_space<vmem>>, vector<1x32xf32>
      %38 = vector.broadcast %37 : vector<1x32xf32> to vector<16x32xf32>
      %39 = arith.mulf %36, %38 : vector<16x32xf32>
      %c0_23 = arith.constant 0 : index
      %c0_24 = arith.constant 0 : index
      %40 = vector.load %arg7[%c0_23, %c0_24] : memref<1x32xf32, #tpu.memory_space<vmem>>, vector<1x32xf32>
      %41 = vector.broadcast %40 : vector<1x32xf32> to vector<16x32xf32>
      %42 = arith.addf %39, %41 : vector<16x32xf32>
      %43 = arith.truncf %42 : vector<16x32xf32> to vector<16x32xbf16>
      %c0_25 = arith.constant 0 : index
      %c0_26 = arith.constant 0 : index
      %44 = vector.load %arg8[%c0_25, %c0_26] : memref<16x32xbf16, #tpu.memory_space<vmem>>, vector<16x32xbf16>
      tpu.vector_store %arg8[%c0_25, %c0_26], %43 {strides = array<i32>} : memref<16x32xbf16, #tpu.memory_space<vmem>>, vector<16x32xbf16>,
    } else {
    }
    return
  }
  func.func @transform_0(%arg0: i32, %arg1: i32) -> (i32, i32) {
    %c0_i32 = arith.constant 0 : i32
    return %arg0, %arg1 : i32, i32
  }
  func.func @transform_1(%arg0: i32, %arg1: i32) -> (i32, i32) {
    %c0_i32 = arith.constant 0 : i32
    %c0_i32_0 = arith.constant 0 : i32
    return %arg1, %c0_i32 : i32, i32
  }
  func.func @transform_2(%arg0: i32, %arg1: i32) -> (i32, i32) {
    %c0_i32 = arith.constant 0 : i32
    %c0_i32_0 = arith.constant 0 : i32
    %c0_i32_1 = arith.constant 0 : i32
    return %c0_i32, %c0_i32_0 : i32, i32
  }
  func.func @transform_3(%arg0: i32, %arg1: i32) -> (i32, i32) {
    %c0_i32 = arith.constant 0 : i32
    %c0_i32_0 = arith.constant 0 : i32
    return %arg0, %c0_i32 : i32, i32
  }
  func.func @transform_4(%arg0: i32, %arg1: i32) -> (i32, i32) {
    %c0_i32 = arith.constant 0 : i32
    %c0_i32_0 = arith.constant 0 : i32
    %c0_i32_1 = arith.constant 0 : i32
    return %c0_i32, %c0_i32_0 : i32, i32
  }
  func.func @transform_5(%arg0: i32, %arg1: i32) -> (i32, i32) {
    %c0_i32 = arith.constant 0 : i32
    %c0_i32_0 = arith.constant 0 : i32
    %c0_i32_1 = arith.constant 0 : i32
    return %c0_i32, %c0_i32_0 : i32, i32
  }
  func.func @transform_6(%arg0: i32, %arg1: i32) -> (i32, i32) {
    %c0_i32 = arith.constant 0 : i32
    %c0_i32_0 = arith.constant 0 : i32
    return %arg0, %c0_i32 : i32, i32
  }
}

module attributes {stable_mosaic.version = 11 : i64} {
  func.func @_linear_kernel_fullk(%arg0: i32, %arg1: i32, %arg2: memref<2x32xbf16, #tpu.memory_space<vmem>>, %arg3: memref<32x32xbf16, #tpu.memory_space<vmem>>, %arg4: memref<1x32xf32, #tpu.memory_space<vmem>>, %arg5: memref<2x32xf32, #tpu.memory_space<vmem>>) attributes {dimension_semantics = [#tpu.dimension_semantics<parallel>, #tpu.dimension_semantics<parallel>], iteration_bounds = array<i64: 1, 1>, scalar_prefetch = 0 : i64, scratch_operands = 0 : i64, tpu.core_type = #tpu.core_type<tc>, window_params = [{transform_indices = @transform_0, window_bounds = array<i64: 2, 32>}, {transform_indices = @transform_1, window_bounds = array<i64: 32, 32>}, {transform_indices = @transform_2, window_bounds = array<i64: 1, 32>}, {transform_indices = @transform_3, window_bounds = array<i64: 2, 32>}]} {
    %c0 = arith.constant 0 : index
    %c0_0 = arith.constant 0 : index
    %0 = vector.load %arg2[%c0, %c0_0] : memref<2x32xbf16, #tpu.memory_space<vmem>>, vector<2x32xbf16>
    %c0_1 = arith.constant 0 : index
    %c0_2 = arith.constant 0 : index
    %1 = vector.load %arg3[%c0_1, %c0_2] : memref<32x32xbf16, #tpu.memory_space<vmem>>, vector<32x32xbf16>
    %cst = arith.constant dense<0.000000e+00> : vector<2x32xf32>
    %2 = tpu.matmul %0, %1, %cst {dimension_numbers = #tpu.dot_dimension_numbers<[1], [0], [0], [1], [0, 0, 1, 1], [], []>} : vector<2x32xbf16>, vector<32x32xbf16>, vector<2x32xf32> -> vector<2x32xf32>
    %c0_3 = arith.constant 0 : index
    %c0_4 = arith.constant 0 : index
    %3 = vector.load %arg4[%c0_3, %c0_4] : memref<1x32xf32, #tpu.memory_space<vmem>>, vector<1x32xf32>
    %4 = vector.broadcast %3 : vector<1x32xf32> to vector<2x32xf32>
    %5 = arith.addf %2, %4 : vector<2x32xf32>
    %6 = math.tanh %5 : vector<2x32xf32>
    %c0_5 = arith.constant 0 : index
    %c0_6 = arith.constant 0 : index
    %7 = vector.load %arg5[%c0_5, %c0_6] : memref<2x32xf32, #tpu.memory_space<vmem>>, vector<2x32xf32>
    tpu.vector_store %arg5[%c0_5, %c0_6], %6 {strides = array<i32>} : memref<2x32xf32, #tpu.memory_space<vmem>>, vector<2x32xf32>,
    return
  }
  func.func @transform_0(%arg0: i32, %arg1: i32) -> (i32, i32) {
    %c0_i32 = arith.constant 0 : i32
    %c0_i32_0 = arith.constant 0 : i32
    return %arg0, %c0_i32 : i32, i32
  }
  func.func @transform_1(%arg0: i32, %arg1: i32) -> (i32, i32) {
    %c0_i32 = arith.constant 0 : i32
    %c0_i32_0 = arith.constant 0 : i32
    return %c0_i32, %arg1 : i32, i32
  }
  func.func @transform_2(%arg0: i32, %arg1: i32) -> (i32, i32) {
    %c0_i32 = arith.constant 0 : i32
    %c0_i32_0 = arith.constant 0 : i32
    return %c0_i32, %arg1 : i32, i32
  }
  func.func @transform_3(%arg0: i32, %arg1: i32) -> (i32, i32) {
    %c0_i32 = arith.constant 0 : i32
    return %arg0, %arg1 : i32, i32
  }
}

</mosaic_0001>

<bundles_post_ra>
// kernel: bit_model_forward.12
= control target key start
LH: loop header
LB: loop body
LE: loop exit
PB: predicated region body
PF: predicated region fallthrough
CT: control target
= control target key end

     0   :  { %s533_s18 = smov 0   ;;  %s535_s19 = smov 0   ;;  %s582_s0 = inlined_call_operand.vmem [shape: f32[2,8,32], index: 0, kind: input, shape index: {}]   ;;  %s583_s1 = inlined_call_operand.vmem [shape: f32[8,32], index: 1, kind: input, shape index: {}]   ;;  %s584_s2 = inlined_call_operand.vmem [shape: f32[2,8,32], index: 2, kind: input, shape index: {}]   ;;  %s585_s3 = inlined_call_operand.vmem [shape: f32[1,32], index: 3, kind: input, shape index: {}]   ;;  %s586_s4 = inlined_call_operand.vmem [shape: f32[1,32], index: 4, kind: input, shape index: {}]   ;;  %s587_s5 = inlined_call_operand.vmem [shape: bf16[2,8,32], index: 5, kind: output, shape index: {}]  }
   0x1   :  { %s537_s20 = smov 0  }
   0x2 LB: > { %s27_s21 = sadd.s32 1, %s497_s19  ;;  %p445_p0 = scmp.ge.s32.totalorder %s501_s20, 1  ;;  %s501_s20 = sphi %s537_s20, %s15_s20   ;;  %s497_s19 = sphi %s535_s19, %s589_s19   ;;  %s493_s18 = sphi %s533_s18, %s588_s18  }
   0x3   : > { %p29_p1 = scmp.ge.s32.totalorder %s27_s21, 2  ;;  %p228_p2 = scmp.lt.s32.totalorder %s501_s20, 3 }
   0x5   : > { %s591_s21 = smov (%p29_p1, %s27_s21), 0  ;;  %p229_p3 = pnand %p445_p0, %p228_p2 }
   0x6   : > { %p271_p4 = scmp.lt.s32.totalorder (!%p229_p3), %s493_s18, 1  ;;  %v297_v0 = vld [vmem:[%s583_s1] sm:$0xff] (!%p229_p3)  ;;  %vm301_vm0 = vcmask (!%p229_p3), 261120   ;;  %vm333_vm1 = vcmask (!%p229_p3), 257024  }
   0x7   : > { %232 = sbr.rel (%p229_p3) target bundleno = 338 (0x152), region = 40  ;;  %v449_v15 = vld [vmem:[%s585_s3] ss:$0 sm:$0xff] (!%p229_p3) }
   0x8   : > { %v450_v17 = vld [vmem:[%s586_s4] ss:$0 sm:$0xff] (!%p229_p3) }
   0xe   : > { %s593_s18 = smov (!%p271_p4, %s493_s18), 1 }
   0xf   : > { %s446_s22 = sshll.u32 %s593_s18, 3  ;;  %s448_s10 = sshll.u32 %s593_s18, 2 }
  0x10   : > { %s277_s27 = scalar_lea.vmem %s582_s0, %s446_s22  ;;  %s288_s30 = scalar_lea.vmem %s584_s2, %s446_s22 }
  0x11   : > { %v296_v1 = vld [vmem:[%s277_s27] sm:$0xff]  ;;  %s295_s13 = scalar_lea.vmem %s587_s5, %s448_s10 }
  0x12   : > { %v299_v2 = vld [vmem:[%s288_s30] sm:$0xff]  ;;  %v298_v3 = vadd.f32 %v297_v0, %v296_v1 }
  0x14   : > { %v300_v4 = vadd.f32 %v299_v2, %v298_v3 }
  0x16   : > { %v302_v5 = vsel %vm301_vm0, %v300_v4, 0.0 }
  0x17   : > { %303 = vadd.xlane.f32.xlu0 %v302_v5 }
  0xa4   : > { %v304_v6 = vpop.xlane.xlu0 %303 }
  0xa5   : > { %v306_v7 = vmul.f32 0.03125, %v304_v6 }
  0xa7   : > { %v307_v8 = vsub.f32 %v300_v4, %v306_v7 }
  0xa9   : > { %v308_v9 = vmul.f32 %v307_v8, %v307_v8 }
  0xab   : > { %v309_v10 = vsel %vm301_vm0, %v308_v9, 0.0 }
  0xac   : > { %310 = vadd.xlane.f32.xlu0 %v309_v10 }
 0x139   : > { %v311_v11 = vpop.xlane.xlu0 %310 }
 0x13a   : > { %v312_v12 = vmul.f32 0.03125, %v311_v11 }
 0x13c   : > { %v313_v13 = vadd.f32 1e-12, %v312_v12 }
 0x13e   : > { %477 = vrsqrt.f32 %v313_v13 }
 0x148   : > { %v478_v14 = vpop.eup %477 }
 0x149   : > { %v315_v16 = vmul.f32 %v478_v14, %v307_v8 }
 0x14b   : > { %v323_v18 = vmul.f32 %v449_v15, %v315_v16 }
 0x14d   : > { %v331_v19 = vadd.f32 %v450_v17, %v323_v18 }
 0x14f   : > { %v332_v20 = vpack.c.bf16 %v331_v19, %v331_v19 }
 0x151   : > { %334 = vst.msk [vmem:[%s295_s13] sm:$0xf] %vm333_vm1, %v332_v20 }
 0x152 PF: > { %s15_s20 = sadd.s32 1, %s501_s20   ;;  %s588_s18 = smov %s497_s19 }
 0x153   : > { %p12_p5 = scmp.ge.s32.totalorder %s15_s20, 4   ;;  %s589_s19 = smov %s591_s21 }
 0x155   :  { %14 = sbr.rel (!%p12_p5) target bundleno = 2 (0x2), region = 76 }

// kernel: bit_model_forward.13
= control target key start
LH: loop header
LB: loop body
LE: loop exit
PB: predicated region body
PF: predicated region fallthrough
CT: control target
= control target key end

     0   :  { %v130_v0 = vmov 0.0   ;;  %vm131_vm0 = vmmov 0   ;;  %vm45_vm1 = vcmask 261120   ;;  %vm98_vm2 = vcmask 781312   ;;  %s170_s1 = inlined_call_operand.vmem [shape: bf16[32,96], index: 1, kind: input, shape index: {}]   ;;  %s171_s0 = inlined_call_operand.vmem [shape: bf16[16,32], index: 0, kind: input, shape index: {}]   ;;  %s172_s2 = inlined_call_operand.vmem [shape: f32[1,96], index: 2, kind: input, shape index: {}]   ;;  %s173_s3 = inlined_call_operand.vmem [shape: bf16[16,96], index: 3, kind: output, shape index: {}]  }
   0x1   :  { %117 = vmatprep.subr.bf16.mxu0 %v130_v0  ;;  %v127_v1 = vld [vmem:[%s170_s1] sm:$0xff]   ;;  %121 = vmatprep.mubr.msk.bf16.mxu0 %vm131_vm0, %v130_v0  ;;  %v128_v2 = vld [vmem:[%s170_s1 + $0x8] sm:$0xff]  }
   0x2   :  { %118 = vmatpush3.bf16.msra.mxu0 %v127_v1  ;;  %v129_v3 = vld [vmem:[%s171_s0] sm:$0xff]  }
   0x3   :  { %119 = vmatprep.subr.bf16.mxu0 %v130_v0  ;;  %v105_v4 = vld [vmem:[%s172_s2] ss:$0 sm:$0xff] }
   0x6   :  { %120 = vmatpush3.bf16.msra.mxu0 %v128_v2 }
   0x9   :  { %122 = vmatmul.mubr.msk.bf16.vlgmr.msra.gmra.mrb[0].mxu0 %vm45_vm1, %v129_v3 }
  0xdc   :  { %v83_v5 = vpop.f32.mrb[0].mxu0 }
  0xdd   :  { %v84_v6 = vadd.f32 %v105_v4, %v83_v5  ;;  %v123_v7 = vpop.f32.mrb[1].mxu0 }
  0xde   :  { %v86_v8 = vpop.f32.mrb[2].mxu0 }
  0xdf   :  { %v112_v9 = vpack.c.bf16 %v84_v6, %v84_v6  ;;  %v87_v10 = vadd.f32 %v105_v4, %v86_v8  ;;  %v124_v11 = vpop.f32.mrb[3].mxu0 }
  0xe1   :  { %99 = vst.msk [vmem:[%s173_s3] sm:$0xf] %vm98_vm2, %v112_v9  ;;  %v113_v12 = vpack.c.bf16 %v87_v10, %v87_v10 }
  0xe3   :  { %100 = vst.msk [vmem:[%s173_s3 + $0x4] sm:$0xf] %vm98_vm2, %v113_v12 }

// kernel: bit_model_forward.15
= control target key start
LH: loop header
LB: loop body
LE: loop exit
PB: predicated region body
PF: predicated region fallthrough
CT: control target
= control target key end

     0   :  { %vm28_vm0 = vcmask 261120   ;;  %v220_v0 = vmov 0.0   ;;  %vm221_vm1 = vmmov 0   ;;  %vm178_vm2 = vcmask 257024   ;;  %s293_s1 = inlined_call_operand.vmem [shape: bf16[32,32], index: 1, kind: input, shape index: {}]   ;;  %s294_s0 = inlined_call_operand.vmem [shape: bf16[16,32], index: 0, kind: input, shape index: {}]   ;;  %s295_s3 = inlined_call_operand.vmem [shape: bf16[16,32], index: 3, kind: input, shape index: {}]   ;;  %s296_s2 = inlined_call_operand.vmem [shape: f32[1,32], index: 2, kind: input, shape index: {}]   ;;  %s297_s4 = inlined_call_operand.vmem [shape: f32[1,32], index: 4, kind: input, shape index: {}]   ;;  %s298_s5 = inlined_call_operand.vmem [shape: f32[1,32], index: 5, kind: input, shape index: {}]   ;;  %s299_s6 = inlined_call_operand.vmem [shape: bf16[16,32], index: 6, kind: output, shape index: {}]  }
   0x1   :  { %203 = vmatprep.subr.bf16.mxu0 %v220_v0  ;;  %v213_v1 = vld [vmem:[%s293_s1] sm:$0xff]   ;;  %207 = vmatprep.mubr.msk.bf16.mxu0 %vm221_vm1, %v220_v0  ;;  %29 = vst.msk [vmem:[#allocation2] sm:$0xff] %vm28_vm0, %v220_v0  ;;  %30 = vst.msk [vmem:[#allocation2 + $0x8] sm:$0xff] %vm28_vm0, %v220_v0  ;;  %v214_v2 = vld [vmem:[%s293_s1 + $0x8] sm:$0xff]  }
   0x2   :  { %204 = vmatpush3.bf16.msra.mxu0 %v213_v1  ;;  %v215_v3 = vld [vmem:[%s294_s0] sm:$0xff]  }
   0x3   :  { %205 = vmatprep.subr.bf16.mxu0 %v220_v0  ;;  %v197_v12 = vld [vmem:[%s295_s3] sm:$0xff]  }
   0x4   :  { %v189_v13 = vld [vmem:[%s296_s2] ss:$0 sm:$0xff]  ;;  %v198_v14 = vunpack.c.l.bf16 %v197_v12  ;;  %v199_v17 = vunpack.c.h.bf16 %v197_v12 }
   0x5   :  { %v190_v41 = vld [vmem:[%s297_s4] ss:$0 sm:$0xff] }
   0x6   :  { %206 = vmatpush3.bf16.msra.mxu0 %v214_v2  ;;  %v191_v43 = vld [vmem:[%s298_s5] ss:$0 sm:$0xff] }
   0x8   :  { %v31_v4 = vld [vmem:[#allocation2] sm:$0xff]  ;;  %v32_v6 = vld [vmem:[#allocation2 + $0x8] sm:$0xff] }
   0x9   :  { %208 = vmatmul.mubr.msk.bf16.vlgmr.msra.gmra.mrb[0].mxu0 %vm28_vm0, %v215_v3 }
  0xdc   :  { %v94_v5 = vpop.f32.mrb[0].mxu0 }
  0xdd   :  { %v101_v7 = vadd.f32 %v94_v5, %v31_v4  ;;  %v209_v8 = vpop.f32.mrb[1].mxu0 }
  0xde   :  { %v97_v9 = vpop.f32.mrb[2].mxu0 }
  0xdf   :  { %103 = vst.msk [vmem:[#allocation2] sm:$0xff] %vm28_vm0, %v101_v7  ;;  %v102_v10 = vadd.f32 %v97_v9, %v32_v6  ;;  %v210_v11 = vpop.f32.mrb[3].mxu0 }
  0xe1   :  { %104 = vst.msk [vmem:[#allocation2 + $0x8] sm:$0xff] %vm28_vm0, %v102_v10 }
  0xe6   :  { %v108_v15 = vld [vmem:[#allocation2] sm:$0xff] }
  0xe7   :  { %v117_v16 = vadd.f32 %v189_v13, %v108_v15 }
  0xe8   :  { %v109_v18 = vld [vmem:[#allocation2 + $0x8] sm:$0xff] }
  0xe9   :  { %v123_v19 = vadd.f32 %v198_v14, %v117_v16  ;;  %v118_v20 = vadd.f32 %v189_v13, %v109_v18 }
  0xeb   :  { %v125_v21 = vsel %vm28_vm0, %v123_v19, 0.0  ;;  %v124_v22 = vadd.f32 %v199_v17, %v118_v20 }
  0xec   :  { %126 = vadd.xlane.f32.xlu0 %v125_v21 }
  0xed   :  { %v128_v23 = vsel %vm28_vm0, %v124_v22, 0.0 }
  0xf0   :  { %129 = vadd.xlane.f32.xlu0 %v128_v23 }
 0x179   :  { %v127_v24 = vpop.xlane.xlu0 %126 }
 0x17a   :  { %v132_v25 = vmul.f32 0.03125, %v127_v24 }
 0x17c   :  { %v134_v26 = vsub.f32 %v123_v19, %v132_v25 }
 0x17d   :  { %v130_v27 = vpop.xlane.xlu0 %129 }
 0x17e   :  { %v133_v28 = vmul.f32 0.03125, %v130_v27  ;;  %v136_v29 = vmul.f32 %v134_v26, %v134_v26 }
 0x180   :  { %v135_v30 = vsub.f32 %v124_v22, %v133_v28  ;;  %v138_v31 = vsel %vm28_vm0, %v136_v29, 0.0 }
 0x181   :  { %139 = vadd.xlane.f32.xlu1 %v138_v31 }
 0x182   :  { %v137_v32 = vmul.f32 %v135_v30, %v135_v30 }
 0x184   :  { %v141_v33 = vsel %vm28_vm0, %v137_v32, 0.0 }
 0x185   :  { %142 = vadd.xlane.f32.xlu1 %v141_v33 }
 0x20e   :  { %v140_v34 = vpop.xlane.xlu1 %139 }
 0x20f   :  { %v144_v35 = vmul.f32 0.03125, %v140_v34 }
 0x211   :  { %v146_v36 = vadd.f32 1e-12, %v144_v35 }
 0x212   :  { %v143_v37 = vpop.xlane.xlu1 %142 }
 0x213   :  { %216 = vrsqrt.f32 %v146_v36  ;;  %v145_v38 = vmul.f32 0.03125, %v143_v37 }
 0x215   :  { %v147_v39 = vadd.f32 1e-12, %v145_v38 }
 0x217   :  { %218 = vrsqrt.f32 %v147_v39 }
 0x21d   :  { %v217_v40 = vpop.eup %216 }
 0x21e   :  { %v150_v42 = vmul.f32 %v217_v40, %v134_v26 }
 0x220   :  { %v159_v44 = vmul.f32 %v190_v41, %v150_v42 }
 0x221   :  { %v219_v45 = vpop.eup %218 }
 0x222   :  { %v168_v46 = vadd.f32 %v191_v43, %v159_v44  ;;  %v151_v47 = vmul.f32 %v219_v45, %v135_v30 }
 0x224   :  { %v194_v48 = vpack.c.bf16 %v168_v46, %v168_v46  ;;  %v160_v49 = vmul.f32 %v190_v41, %v151_v47 }
 0x226   :  { %179 = vst.msk [vmem:[%s299_s6] sm:$0xf] %vm178_vm2, %v194_v48  ;;  %v169_v50 = vadd.f32 %v191_v43, %v160_v49 }
 0x228   :  { %v195_v51 = vpack.c.bf16 %v169_v50, %v169_v50 }
 0x22a   :  { %180 = vst.msk [vmem:[%s299_s6 + $0x4] sm:$0xf] %vm178_vm2, %v195_v51 }

// kernel: bit_model_forward.16
= control target key start
LH: loop header
LB: loop body
LE: loop exit
PB: predicated region body
PF: predicated region fallthrough
CT: control target
= control target key end

     0   :  { %v152_v0 = vmov 0.0   ;;  %vm153_vm0 = vmmov 0   ;;  %vm45_vm1 = vcmask 261120   ;;  %vm116_vm2 = vcmask 519168   ;;  %s192_s1 = inlined_call_operand.vmem [shape: bf16[32,64], index: 1, kind: input, shape index: {}]   ;;  %s193_s0 = inlined_call_operand.vmem [shape: bf16[16,32], index: 0, kind: input, shape index: {}]   ;;  %s194_s2 = inlined_call_operand.vmem [shape: f32[1,64], index: 2, kind: input, shape index: {}]   ;;  %s195_s3 = inlined_call_operand.vmem [shape: bf16[16,64], index: 3, kind: output, shape index: {}]  }
   0x1   :  { %135 = vmatprep.subr.bf16.mxu0 %v152_v0  ;;  %v145_v1 = vld [vmem:[%s192_s1] sm:$0xff]   ;;  %139 = vmatprep.mubr.msk.bf16.mxu0 %vm153_vm0, %v152_v0  ;;  %v146_v2 = vld [vmem:[%s192_s1 + $0x8] sm:$0xff]  }
   0x2   :  { %136 = vmatpush3.bf16.msra.mxu0 %v145_v1  ;;  %v147_v3 = vld [vmem:[%s193_s0] sm:$0xff]  }
   0x3   :  { %137 = vmatprep.subr.bf16.mxu0 %v152_v0  ;;  %v123_v4 = vld [vmem:[%s194_s2] ss:$0 sm:$0xff] }
   0x6   :  { %138 = vmatpush3.bf16.msra.mxu0 %v146_v2 }
   0x9   :  { %140 = vmatmul.mubr.msk.bf16.vlgmr.msra.gmra.mrb[0].mxu0 %vm45_vm1, %v147_v3 }
  0xdc   :  { %v83_v5 = vpop.f32.mrb[0].mxu0 }
  0xdd   :  { %v84_v6 = vadd.f32 %v123_v4, %v83_v5  ;;  %v141_v7 = vpop.f32.mrb[1].mxu0 }
  0xde   :  { %v86_v8 = vpop.f32.mrb[2].mxu0 }
  0xdf   :  { %v92_v9 = vmul.f32 0.044715, %v84_v6  ;;  %v87_v10 = vadd.f32 %v123_v4, %v86_v8  ;;  %v142_v11 = vpop.f32.mrb[3].mxu0  ;;  %v90_v22 = vmul.f32 0.5, %v84_v6 }
  0xe1   :  { %v94_v12 = vmul.f32 %v92_v9, %v84_v6  ;;  %v93_v13 = vmul.f32 0.044715, %v87_v10  ;;  %v91_v26 = vmul.f32 0.5, %v87_v10 }
  0xe3   :  { %v96_v14 = vmul.f32 %v94_v12, %v84_v6  ;;  %v95_v15 = vmul.f32 %v93_v13, %v87_v10 }
  0xe5   :  { %v98_v16 = vadd.f32 %v96_v14, %v84_v6  ;;  %v97_v17 = vmul.f32 %v95_v15, %v87_v10 }
  0xe7   :  { %v100_v18 = vmul.f32 0.7978846, %v98_v16  ;;  %v99_v19 = vadd.f32 %v97_v17, %v87_v10 }
  0xe9   :  { %148 = vtanh.f32 %v100_v18  ;;  %v101_v20 = vmul.f32 0.7978846, %v99_v19 }
  0xeb   :  { %150 = vtanh.f32 %v101_v20 }
  0xf3   :  { %v149_v21 = vpop.eup %148 }
  0xf4   :  { %v104_v23 = vadd.f32 1.0, %v149_v21 }
  0xf5   :  { %v151_v24 = vpop.eup %150 }
  0xf6   :  { %v106_v25 = vmul.f32 %v104_v23, %v90_v22  ;;  %v105_v27 = vadd.f32 1.0, %v151_v24 }
  0xf8   :  { %v130_v28 = vpack.c.bf16 %v106_v25, %v106_v25  ;;  %v107_v29 = vmul.f32 %v105_v27, %v91_v26 }
  0xfa   :  { %117 = vst.msk [vmem:[%s195_s3] sm:$0xf] %vm116_vm2, %v130_v28  ;;  %v131_v30 = vpack.c.bf16 %v107_v29, %v107_v29 }
  0xfc   :  { %118 = vst.msk [vmem:[%s195_s3 + $0x4] sm:$0xf] %vm116_vm2, %v131_v30 }

// kernel: bit_model_forward.14
= control target key start
LH: loop header
LB: loop body
LE: loop exit
PB: predicated region body
PF: predicated region fallthrough
CT: control target
= control target key end

     0   :  { %s2123_s15 = smov 0   ;;  %s2125_s16 = smov 0   ;;  %s2424_s0 = inlined_call_operand.vmem [shape: bf16[2,8,3,2,16], index: 0, kind: input, shape index: {}, may-alias: {0,1,2}]   ;;  %s2425_s1 = inlined_call_operand.vmem [shape: bf16[2,8,3,2,16], index: 1, kind: input, shape index: {}, may-alias: {0,1,2}]   ;;  %s2426_s2 = inlined_call_operand.vmem [shape: bf16[2,8,3,2,16], index: 2, kind: input, shape index: {}, may-alias: {0,1,2}]   ;;  %s2427_s3 = inlined_call_operand.vmem [shape: f32[2,1,8], index: 3, kind: input, shape index: {}]   ;;  %s2428_s4 = inlined_call_operand.vmem [shape: bf16[2,8,32], index: 4, kind: output, shape index: {}]  }
   0x1   :  { %s2127_s17 = smov 0   ;;  %s2129_s18 = smov 0  }
   0x2   :  { %s2131_s19 = smov 0  }
   0x3 LB: > { %s33_s20 = sadd.s32 1, %s2086_s18  ;;  %p49_p1 = scmp.ne.s32.totalorder %s2078_s16, %s2074_s15  ;;  %s2090_s19 = sphi %s2131_s19, %s14_s19   ;;  %s2086_s18 = sphi %s2129_s18, %s2433_s18   ;;  %s2082_s17 = sphi %s2127_s17, %s2432_s17   ;;  %s2078_s16 = sphi %s2125_s16, %s2431_s16   ;;  %s2074_s15 = sphi %s2123_s15, %s2430_s15  }
   0x4   : > { %p35_p0 = scmp.ge.s32.totalorder %s33_s20, 2  ;;  %p50_p2 = scmp.eq.s32.totalorder %s2090_s19, 0 }
   0x5   : > { %s42_s23 = sadd.s32 1, %s2078_s16  ;;  %p1879_p5 = scmp.ge.s32.totalorder %s2090_s19, 2 }
   0x6   : > { %s2435_s20 = smov (%p35_p0, %s33_s20), 0  ;;  %p2154_p3 = por %p50_p2, %p49_p1 }
   0x7   : > { %s37_s22 = ssub.s32 %s2086_s18, %s2435_s20  ;;  %187 = sbr.rel (%p1879_p5) target bundleno = 44 (0x2c), region = 16 }
   0x8   : > { %p40_p4 = scmp.eq.s32.totalorder %s37_s22, 0 }
   0xa   : > { %s2162_s24 = scalar_select %p40_p4, %s2078_s16, %s42_s23  }
   0xe   : > { %190 = sbr.rel (!%p2154_p3) target bundleno = 24 (0x18), region = 20  ;;  %s192_s25 = sand.u32 (%p2154_p3), 1, %s2078_s16  }
   0xf   : > { %s1991_s26 = smul.u32 (%p2154_p3), 24, %s2086_s18  ;;  %s1880_s27 = sshll.u32 (%p2154_p3), %s192_s25, 3 }
  0x10   : > { %s194_s5 = scalar_lea.vmem (%p2154_p3), [#allocation5], %s1880_s27 }
  0x11   : > { %s199_s30 = scalar_lea.vmem (%p2154_p3), %s2424_s0, %s1991_s26 }
  0x12   : > { %v215_v0 = vld [vmem:[%s199_s30] sm:$0x1] (%p2154_p3)  ;;  %v217_v1 = vld [vmem:[%s199_s30 + $0x3] sm:$0x1] (%p2154_p3)  ;;  %v219_v2 = vld [vmem:[%s199_s30 + $0x6] sm:$0x1] (%p2154_p3) }
  0x13   : > { %216 = vst [vmem:[%s194_s5] sm:$0x1] (%p2154_p3), %v215_v0  ;;  %218 = vst [vmem:[%s194_s5 + $0x1] sm:$0x1] (%p2154_p3), %v217_v1  ;;  %v221_v3 = vld [vmem:[%s199_s30 + $0x9] sm:$0x1] (%p2154_p3) }
  0x14   : > { %220 = vst [vmem:[%s194_s5 + $0x2] sm:$0x1] (%p2154_p3), %v219_v2  ;;  %v223_v4 = vld [vmem:[%s199_s30 + $0xc] sm:$0x1] (%p2154_p3)  ;;  %v225_v5 = vld [vmem:[%s199_s30 + $0xf] sm:$0x1] (%p2154_p3) }
  0x15   : > { %222 = vst [vmem:[%s194_s5 + $0x3] sm:$0x1] %v221_v3  ;;  %224 = vst [vmem:[%s194_s5 + $0x4] sm:$0x1] %v223_v4  ;;  %v227_v6 = vld [vmem:[%s199_s30 + $0x12] sm:$0x1] }
  0x16   : > { %226 = vst [vmem:[%s194_s5 + $0x5] sm:$0x1] %v225_v5  ;;  %v229_v7 = vld [vmem:[%s199_s30 + $0x15] sm:$0x1]  ;;  %228 = vst [vmem:[%s194_s5 + $0x6] sm:$0x1] %v227_v6 }
  0x17   : > { %230 = vst [vmem:[%s194_s5 + $0x7] sm:$0x1] %v229_v7 }
  0x18 PF: > { %269 = sbr.rel (!%p2154_p3) target bundleno = 34 (0x22), region = 61  ;;  %s271_s6 = sand.u32 (%p2154_p3), 1, %s2078_s16  }
  0x19   : > { %s1774_s7 = smul.u32 (%p2154_p3), 24, %s2086_s18  ;;  %s1881_s8 = sshll.u32 (%p2154_p3), %s271_s6, 3 }
  0x1a   : > { %s273_s12 = scalar_lea.vmem (%p2154_p3), [#allocation6], %s1881_s8 }
  0x1b   : > { %s1776_s11 = scalar_lea.vmem (%p2154_p3), %s2425_s1, %s1774_s7 }
  0x1c   : > { %v1882_v8 = vld [vmem:[%s1776_s11 + $0x1] sm:$0x1] (%p2154_p3)  ;;  %v1883_v9 = vld [vmem:[%s1776_s11 + $0x4] sm:$0x1] (%p2154_p3)  ;;  %v1884_v10 = vld [vmem:[%s1776_s11 + $0x7] sm:$0x1] (%p2154_p3) }
  0x1d   : > { %296 = vst [vmem:[%s273_s12] sm:$0x1] (%p2154_p3), %v1882_v8  ;;  %298 = vst [vmem:[%s273_s12 + $0x1] sm:$0x1] (%p2154_p3), %v1883_v9  ;;  %v1885_v11 = vld [vmem:[%s1776_s11 + $0xa] sm:$0x1] (%p2154_p3) }
  0x1e   : > { %300 = vst [vmem:[%s273_s12 + $0x2] sm:$0x1] (%p2154_p3), %v1884_v10  ;;  %v1886_v12 = vld [vmem:[%s1776_s11 + $0xd] sm:$0x1] (%p2154_p3)  ;;  %v1887_v13 = vld [vmem:[%s1776_s11 + $0x10] sm:$0x1] (%p2154_p3) }
  0x1f   : > { %302 = vst [vmem:[%s273_s12 + $0x3] sm:$0x1] %v1885_v11  ;;  %304 = vst [vmem:[%s273_s12 + $0x4] sm:$0x1] %v1886_v12  ;;  %v1888_v14 = vld [vmem:[%s1776_s11 + $0x13] sm:$0x1] }
  0x20   : > { %306 = vst [vmem:[%s273_s12 + $0x5] sm:$0x1] %v1887_v13  ;;  %v1889_v15 = vld [vmem:[%s1776_s11 + $0x16] sm:$0x1]  ;;  %308 = vst [vmem:[%s273_s12 + $0x6] sm:$0x1] %v1888_v14 }
  0x21   : > { %310 = vst [vmem:[%s273_s12 + $0x7] sm:$0x1] %v1889_v15 }
  0x22 PF: > { %349 = sbr.rel (!%p2154_p3) target bundleno = 44 (0x2c), region = 102  ;;  %s351_s13 = sand.u32 (%p2154_p3), 1, %s2078_s16  }
  0x23   : > { %s1781_s14 = smul.u32 (%p2154_p3), 24, %s2086_s18  ;;  %s1890_s22 = sshll.u32 (%p2154_p3), %s351_s13, 3 }
  0x24   : > { %s353_s27 = scalar_lea.vmem (%p2154_p3), [#allocation7], %s1890_s22 }
  0x25   : > { %s1783_s26 = scalar_lea.vmem (%p2154_p3), %s2426_s2, %s1781_s14 }
  0x26   : > { %v1891_v16 = vld [vmem:[%s1783_s26 + $0x2] sm:$0x1] (%p2154_p3)  ;;  %v1892_v17 = vld [vmem:[%s1783_s26 + $0x5] sm:$0x1] (%p2154_p3)  ;;  %v1893_v18 = vld [vmem:[%s1783_s26 + $0x8] sm:$0x1] (%p2154_p3) }
  0x27   : > { %376 = vst [vmem:[%s353_s27] sm:$0x1] (%p2154_p3), %v1891_v16  ;;  %378 = vst [vmem:[%s353_s27 + $0x1] sm:$0x1] (%p2154_p3), %v1892_v17  ;;  %v1894_v19 = vld [vmem:[%s1783_s26 + $0xb] sm:$0x1] (%p2154_p3) }
  0x28   : > { %380 = vst [vmem:[%s353_s27 + $0x2] sm:$0x1] (%p2154_p3), %v1893_v18  ;;  %v1895_v20 = vld [vmem:[%s1783_s26 + $0xe] sm:$0x1] (%p2154_p3)  ;;  %v1896_v21 = vld [vmem:[%s1783_s26 + $0x11] sm:$0x1] (%p2154_p3) }
  0x29   : > { %382 = vst [vmem:[%s353_s27 + $0x3] sm:$0x1] %v1894_v19  ;;  %384 = vst [vmem:[%s353_s27 + $0x4] sm:$0x1] %v1895_v20  ;;  %v1897_v22 = vld [vmem:[%s1783_s26 + $0x14] sm:$0x1] }
  0x2a   : > { %386 = vst [vmem:[%s353_s27 + $0x5] sm:$0x1] %v1896_v21  ;;  %v1898_v23 = vld [vmem:[%s1783_s26 + $0x17] sm:$0x1]  ;;  %388 = vst [vmem:[%s353_s27 + $0x6] sm:$0x1] %v1897_v22 }
  0x2b   : > { %390 = vst [vmem:[%s353_s27 + $0x7] sm:$0x1] %v1898_v23 }
  0x2c PF: > { %p1899_p6 = scmp.ge.s32.totalorder %s2090_s19, 1  ;;  %p437_p7 = scmp.lt.s32.totalorder %s2090_s19, 3 }
  0x2e   : > { %p438_p8 = pnand %p1899_p6, %p437_p7 }
  0x2f   : > { %s444_s21 = sand.u32 (!%p438_p8), 1, %s2074_s15   ;;  %vm525_vm0 = vcmask (!%p438_p8), 130048   ;;  %v571_v24 = vlaneseq (!%p438_p8)  ;;  %v2092_v25 = vmov (!%p438_p8), 0.0   ;;  %v2093_v26 = vmov (!%p438_p8), 1966171168   ;;  %p502_p9 = scmp.lt.s32.totalorder (!%p438_p8), %s2082_s17, 1 }
  0x30   : > { %441 = sbr.rel (%p438_p8) target bundleno = 1508 (0x5e4), region = 147  ;;  %1967 = vmatprep.subr.bf16.mxu0 (!%p438_p8), %v2092_v25  ;;  %s2190_s28 = sshll.u32 (!%p438_p8), %s444_s21, 3  ;;  %v569_v27 = vunpack.c.l.s4 (!%p438_p8), %v2093_v26  ;;  %526 = vst.msk [vmem:[#allocation4] sm:$0xff] (!%p438_p8), %vm525_vm0, %v2092_v25  ;;  %527 = vst.msk [vmem:[#allocation4 + $0x8] sm:$0xff] (!%p438_p8), %vm525_vm0, %v2092_v25  ;;  %1973 = vmatprep.subr.bf16.mxu1 (!%p438_p8), %v2092_v25  ;;  %vm2094_vm1 = vmmov (!%p438_p8), 0   ;;  %vm682_vm2 = vcmask (!%p438_p8), 1041409  }
  0x31   : > { %v572_v28 = vshrl.u32 (!%p438_p8), %v571_v24, 7  ;;  %s453_s15 = scalar_lea.vmem (!%p438_p8), [#allocation6], %s2190_s28  ;;  %1969 = vmatprep.mubr.msk.bf16.mxu0 (!%p438_p8), %vm2094_vm1, %v2092_v25  ;;  %1975 = vmatprep.mubr.msk.bf16.mxu1 (!%p438_p8), %vm2094_vm1, %v2092_v25  ;;  %vm685_vm3 = vcmask (!%p438_p8), 1042434   ;;  %vm688_vm4 = vcmask (!%p438_p8), 1043459   ;;  %vm691_vm5 = vcmask (!%p438_p8), 1044484   ;;  %s2227_s29 = scalar_lea.vmem (!%p438_p8), [#allocation5], %s2190_s28 }
  0x32   : > { %v1912_v29 = vld.sshfl [vmem:[%s453_s15] sm:$0x1 pattern:$0x75316420] (!%p438_p8)  ;;  %v570_v30 = vunpack.c.0.s8 (!%p438_p8), %v569_v27  ;;  %vm694_vm6 = vcmask (!%p438_p8), 1045509   ;;  %vm697_vm7 = vcmask (!%p438_p8), 1046534  }
  0x33   : > { %v1913_v31 = vld.sshfl [vmem:[%s453_s15 + $0x1] sm:$0x1 pattern:$0x75316420] (!%p438_p8)  ;;  %vm700_vm8 = vcmask (!%p438_p8), 1047559   ;;  %vm520_vm9 = vcmask (!%p438_p8), 7168  }
  0x34   : > { %v1914_v32 = vld.sshfl [vmem:[%s453_s15 + $0x2] sm:$0x1 pattern:$0x75316420] (!%p438_p8)  ;;  %v2202_v33 = vsub.s32 (!%p438_p8), %v570_v30, %v572_v28  ;;  %523 = vst.msk [vmem:[#allocation3] sm:$0xff] (!%p438_p8), %vm520_vm9, %v2092_v25  ;;  %524 = vst.msk [vmem:[#allocation3 + $0x8] sm:$0xff] (!%p438_p8), %vm520_vm9, %v2092_v25 }
  0x35   : > { %v1915_v34 = vld.sshfl [vmem:[%s453_s15 + $0x3] sm:$0x1 pattern:$0x75316420] (!%p438_p8)  ;;  %vm902_vm10 = vcmask (!%p438_p8), 64512   ;;  %s460_s7 = scalar_lea.vmem (!%p438_p8), [#allocation7], %s2190_s28 }
  0x36   : > { %v1916_v35 = vld.sshfl [vmem:[%s453_s15 + $0x4] sm:$0x1 pattern:$0x75316420] (!%p438_p8)  ;;  %v724_v36 = vrot.slane (!%p438_p8), %v1912_v29, %v2202_v33  ;;  %v738_v37 = vrot.slane (!%p438_p8), %v1913_v31, %v2202_v33  ;;  %v752_v38 = vrot.slane (!%p438_p8), %v1914_v32, %v2202_v33  ;;  %v766_v39 = vrot.slane (!%p438_p8), %v1915_v34, %v2202_v33  ;;  %s2097_s8 = smov (!%p438_p8), 16  }
  0x37   : > { %v1917_v40 = vld.sshfl [vmem:[%s453_s15 + $0x5] sm:$0x1 pattern:$0x75316420]  ;;  %v780_v41 = vrot.slane %v1916_v35, %v2202_v33  ;;  %s2437_s17 = smov (!%p502_p9, %s2082_s17), 1  ;;  %vm1080_vm11 = vcmask 1043456  }
  0x38   : > { %v1918_v42 = vld.sshfl [vmem:[%s453_s15 + $0x6] sm:$0x1 pattern:$0x75316420]  ;;  %v794_v43 = vrot.slane %v1917_v40, %v2202_v33  ;;  %v2210_v44 = vunpack.c.l.b16 %v724_v36  ;;  %v2212_v45 = vunpack.c.l.b16 %v738_v37  ;;  %v2214_v46 = vunpack.c.l.b16 %v752_v38  ;;  %s507_s6 = scalar_lea.vmem %s2427_s3, %s2437_s17  ;;  %s1903_s9 = sshll.u32 %s2437_s17, 2 }
  0x39   : > { %v1919_v47 = vld.sshfl [vmem:[%s453_s15 + $0x7] sm:$0x1 pattern:$0x75316420]  ;;  %v808_v48 = vrot.slane %v1918_v42, %v2202_v33  ;;  %v2217_v49 = vunpack.c.l.b16 %v766_v39  ;;  %v2219_v50 = vunpack.c.l.b16 %v780_v41  ;;  %s514_s12 = scalar_lea.vmem %s2428_s4, %s1903_s9  ;;  %vm1738_vm12 = vcmask 257024  }
  0x3a   : > { %v822_v51 = vrot.slane %v1919_v47, %v2202_v33  ;;  %v2222_v52 = vunpack.c.l.b16 %v794_v43  ;;  %v831_v53 = vrot.slane %v2212_v45, 7  ;;  %v833_v54 = vrot.slane %v2214_v46, 6  ;;  %v1904_v55 = vld.sshfl [vmem:[%s2227_s29] sm:$0x1 pattern:$0x75316420] }
  0x3b   : > { %v2230_v56 = vunpack.c.l.b16 %v808_v48  ;;  %v835_v57 = vrot.slane %v2217_v49, 5  ;;  %v837_v58 = vrot.slane %v2219_v50, 4  ;;  %v1905_v59 = vld.sshfl [vmem:[%s2227_s29 + $0x1] sm:$0x1 pattern:$0x75316420]  ;;  %v574_v60 = vrot.slane %v1904_v55, %v2202_v33 }
  0x3c   : > { %v2236_v61 = vunpack.c.l.b16 %v822_v51  ;;  %v832_v62 = vsel %vm682_vm2, %v831_v53, %v2210_v44  ;;  %v839_v63 = vrot.slane %v2222_v52, 3  ;;  %v1906_v0 = vld.sshfl [vmem:[%s2227_s29 + $0x2] sm:$0x1 pattern:$0x75316420]  ;;  %v588_v1 = vrot.slane %v1905_v59, %v2202_v33 }
  0x3d   : > { %v834_v2 = vsel %vm685_vm3, %v833_v54, %v832_v62  ;;  %v841_v3 = vrot.slane %v2230_v56, 2  ;;  %v1907_v4 = vld.sshfl [vmem:[%s2227_s29 + $0x3] sm:$0x1 pattern:$0x75316420]  ;;  %v602_v5 = vrot.slane %v1906_v0, %v2202_v33  ;;  %v2247_v6 = vunpack.c.l.b16 %v574_v60 }
  0x3e   : > { %v836_v7 = vsel %vm688_vm4, %v835_v57, %v834_v2  ;;  %v843_v8 = vrot.slane %v2236_v61, 1  ;;  %v1908_v9 = vld.sshfl [vmem:[%s2227_s29 + $0x4] sm:$0x1 pattern:$0x75316420]  ;;  %v616_v10 = vrot.slane %v1907_v4, %v2202_v33  ;;  %v2253_v11 = vunpack.c.l.b16 %v588_v1 }
  0x3f   : > { %v838_v12 = vsel %vm691_vm5, %v837_v58, %v836_v7  ;;  %v1909_v13 = vld.sshfl [vmem:[%s2227_s29 + $0x5] sm:$0x1 pattern:$0x75316420]  ;;  %v630_v14 = vrot.slane %v1908_v9, %v2202_v33  ;;  %v2258_v15 = vunpack.c.l.b16 %v602_v5  ;;  %v2095_v54 = vmov -inf  }
  0x40   : > { %v840_v16 = vsel %vm694_vm6, %v839_v63, %v838_v12  ;;  %v1910_v17 = vld.sshfl [vmem:[%s2227_s29 + $0x6] sm:$0x1 pattern:$0x75316420]  ;;  %v644_v18 = vrot.slane %v1909_v13, %v2202_v33  ;;  %v2263_v19 = vunpack.c.l.b16 %v616_v10  ;;  %v681_v20 = vrot.slane %v2253_v11, 7  ;;  %521 = vst.msk [vmem:[#allocation2] sm:$0xff] %vm520_vm9, %v2095_v54 }
  0x41   : > { %v842_v21 = vsel %vm697_vm7, %v841_v3, %v840_v16  ;;  %v1911_v22 = vld.sshfl [vmem:[%s2227_s29 + $0x7] sm:$0x1 pattern:$0x75316420]  ;;  %v658_v23 = vrot.slane %v1910_v17, %v2202_v33  ;;  %v2269_v24 = vunpack.c.l.b16 %v630_v14  ;;  %v684_v26 = vrot.slane %v2258_v15, 6  ;;  %522 = vst.msk [vmem:[#allocation2 + $0x8] sm:$0xff] %vm520_vm9, %v2095_v54 }
  0x42   : > { %v844_v27 = vsel %vm700_vm8, %v843_v8, %v842_v21  ;;  %v672_v28 = vrot.slane %v1911_v22, %v2202_v33  ;;  %v2274_v29 = vunpack.c.l.b16 %v644_v18  ;;  %v683_v30 = vsel %vm682_vm2, %v681_v20, %v2247_v6  ;;  %v2312_v57 = vld [vmem:[%s507_s6] ss:$0 sm:$0xff]  ;;  %v1923_v2 = vld.sshfl [vmem:[%s460_s7 + $0x1] sm:$0x1 pattern:$0x75316420] }
  0x43   : > { %v845_v31 = vpack.c.b16 %v844_v27, %v844_v27  ;;  %v2278_v32 = vunpack.c.l.b16 %v658_v23  ;;  %v686_v34 = vsel %vm685_vm3, %v684_v26, %v683_v30  ;;  %v687_v35 = vrot.slane %v2263_v19, 5  ;;  %v1924_v3 = vld.sshfl [vmem:[%s460_s7 + $0x2] sm:$0x1 pattern:$0x75316420] }
  0x44   : > { %v2282_v36 = vunpack.c.l.b16 %v672_v28  ;;  %v690_v37 = vrot.slane %v2269_v24, 4  ;;  %v693_v38 = vrot.slane %v2274_v29, 3  ;;  %v2096_v1 = vmov 0  }
  0x45   : > { %v851_v39 = vsel %vm525_vm0, %v845_v31, 0  ;;  %v689_v40 = vsel %vm688_vm4, %v687_v35, %v686_v34  ;;  %v696_v41 = vrot.slane %v2278_v32, 2  ;;  %2038 = vset.pattern.permute.xlu0 %v2096_v1  ;;  %2039 = vset.pattern.permute.xlu1 %v2096_v1  ;;  %v969_v4 = vrot.slane %v1923_v2, %v2202_v33  ;;  %v1922_v5 = vld.sshfl [vmem:[%s460_s7] sm:$0x1 pattern:$0x75316420] }
  0x46   : > { %1968 = vmatpush3.bf16.xpose.msra.mxu0 %v851_v39  ;;  %v692_v42 = vsel %vm691_vm5, %v690_v37, %v689_v40  ;;  %v699_v43 = vrot.slane %v2282_v36, 1  ;;  %v983_v7 = vrot.slane %v1924_v3, %v2202_v33  ;;  %v1925_v9 = vld.sshfl [vmem:[%s460_s7 + $0x3] sm:$0x1 pattern:$0x75316420]  ;;  %v955_v10 = vrot.slane %v1922_v5, %v2202_v33 }
  0x47   : > { %v695_v47 = vsel %vm694_vm6, %v693_v38, %v692_v42  ;;  %1985 = vmatprep.subr.bf16.mxu0 %v2092_v25  ;;  %v2322_v8 = vld [vmem:[#allocation2] sm:$0xff]  ;;  %v1055_v12 = vunpack.c.l.b16 %v969_v4  ;;  %v1926_v13 = vld.sshfl [vmem:[%s460_s7 + $0x4] sm:$0x1 pattern:$0x75316420]  ;;  %v997_v14 = vrot.slane %v1925_v9, %v2202_v33 }
  0x48   : > { %v698_v48 = vsel %vm697_vm7, %v696_v41, %v695_v47  ;;  %v1056_v16 = vunpack.c.l.b16 %v983_v7  ;;  %v1927_v18 = vld.sshfl [vmem:[%s460_s7 + $0x5] sm:$0x1 pattern:$0x75316420]  ;;  %v1011_v20 = vrot.slane %v1926_v13, %v2202_v33  ;;  %v1054_v21 = vunpack.c.l.b16 %v955_v10 }
  0x49   : > { %v701_v51 = vsel %vm700_vm8, %v699_v43, %v698_v48  ;;  %v1062_v22 = vrot.slane %v1055_v12, 7  ;;  %v1928_v26 = vld.sshfl [vmem:[%s460_s7 + $0x6] sm:$0x1 pattern:$0x75316420]  ;;  %v1025_v27 = vrot.slane %v1927_v18, %v2202_v33  ;;  %v1057_v28 = vunpack.c.l.b16 %v997_v14 }
  0x4a   : > { %v702_v53 = vpack.c.b16 %v701_v51, %v701_v51  ;;  %v1064_v30 = vrot.slane %v1056_v16, 6  ;;  %v1929_v31 = vld.sshfl [vmem:[%s460_s7 + $0x7] sm:$0x1 pattern:$0x75316420]  ;;  %v1039_v34 = vrot.slane %v1928_v26, %v2202_v33  ;;  %v1058_v35 = vunpack.c.l.b16 %v1011_v20 }
  0x4b   : > { %v1063_v37 = vsel %vm682_vm2, %v1062_v22, %v1054_v21  ;;  %v1053_v39 = vrot.slane %v1929_v31, %v2202_v33  ;;  %v1059_v40 = vunpack.c.l.b16 %v1025_v27  ;;  %v1066_v43 = vrot.slane %v1057_v28, 5 }
  0x4c   : > { %v1065_v41 = vsel %vm685_vm3, %v1064_v30, %v1063_v37  ;;  %v1060_v42 = vunpack.c.l.b16 %v1039_v34  ;;  %v1068_v47 = vrot.slane %v1058_v35, 4  ;;  %v1653_v1 = vrot.slane %v1058_v35, 5 }
  0x4d   : > { %1970 = vmatmul.mubr.msk.bf16.vlgmr.msra.gmra.mrb[0].mxu0 %vm525_vm0, %v702_v53  ;;  %v1061_v48 = vunpack.c.l.b16 %v1053_v39  ;;  %v1070_v51 = vrot.slane %v1059_v40, 3  ;;  %v1067_v53 = vsel %vm688_vm4, %v1066_v43, %v1065_v41  ;;  %v1655_v4 = vrot.slane %v1059_v40, 4 }
  0x4e   : > { %1987 = vmatprep.mubr.msk.bf16.mxu0 %vm2094_vm1, %v2092_v25  ;;  %v1072_v54 = vrot.slane %v1060_v42, 2  ;;  %v1657_v9 = vrot.slane %v1060_v42, 3  ;;  %v1422_v22 = vrot.slane %v2210_v44, 1  ;;  %v1424_v26 = vrot.slane %v2214_v46, 7 }
  0x4f   : > { %v1659_v13 = vrot.slane %v1061_v48, 2  ;;  %v1428_v31 = vrot.slane %v2219_v50, 5  ;;  %v1279_v35 = vrot.slane %v2247_v6, 1  ;;  %v1430_v37 = vrot.slane %v2222_v52, 4 }
  0x50   : > { %v1423_v27 = vsel %vm682_vm2, %v2212_v45, %v1422_v22  ;;  %v1281_v46 = vrot.slane %v2258_v15, 7  ;;  %v1283_v42 = vrot.slane %v2263_v19, 6  ;;  %v1434_v52 = vrot.slane %v2236_v61, 2 }
  0x51   : > { %v1425_v30 = vsel %vm685_vm3, %v1424_v26, %v1423_v27  ;;  %v1280_v45 = vsel %vm682_vm2, %v2253_v11, %v1279_v35  ;;  %v1285_v15 = vrot.slane %v2269_v24, 5  ;;  %v1289_v19 = vrot.slane %v2278_v32, 3 }
  0x52   : > { %v1282_v6 = vsel %vm685_vm3, %v1281_v46, %v1280_v45  ;;  %v1291_v61 = vrot.slane %v2282_v36, 2 }
 0x120   : > { %v887_v55 = vpop.f32.mrb[0].mxu0 }
 0x121   : > { %v893_v58 = vmul.f32 0.25, %v887_v55  ;;  %v1971_v59 = vpop.f32.mrb[1].mxu0  ;;  %v1069_v55 = vsel %vm691_vm5, %v1068_v47, %v1067_v53 }
 0x122   : > { %v890_v60 = vpop.f32.mrb[2].mxu0  ;;  %v1071_v59 = vsel %vm694_vm6, %v1070_v51, %v1069_v55 }
 0x123   : > { %v1972_v62 = vpop.f32.mrb[3].mxu0  ;;  %v2315_v63 = vadd.f32 %v2312_v57, %v893_v58  ;;  %v1074_v58 = vrot.slane %v1061_v48, 1  ;;  %v1647_v60 = vrot.slane %v1054_v21, 1  ;;  %v1073_v33 = vsel %vm697_vm7, %v1072_v54, %v1071_v59 }
 0x124   : > { %v1649_v62 = vrot.slane %v1056_v16, 7 }
 0x125   : > { %v903_v0 = vsel %vm902_vm10, %v2315_v63, -inf  ;;  %v1075_v2 = vsel %vm700_vm8, %v1074_v58, %v1073_v33  ;;  %v1648_v3 = vsel %vm682_vm2, %v1055_v12, %v1647_v60  ;;  %v918_v60 = vld [vmem:[#allocation3] sm:$0xff] }
 0x126   : > { %904 = vmax.xlane.f32.xlu0 %v903_v0  ;;  %v1651_v0 = vrot.slane %v1057_v28, 6  ;;  %v1076_v5 = vpack.c.b16 %v1075_v2, %v1075_v2  ;;  %v1650_v7 = vsel %vm685_vm3, %v1649_v62, %v1648_v3  ;;  %v1426_v28 = vrot.slane %v2217_v49, 6 }
 0x127   : > { %v1432_v49 = vrot.slane %v2230_v56, 3  ;;  %v1287_v56 = vrot.slane %v2274_v29, 4 }
 0x128   : > { %v1652_v10 = vsel %vm688_vm4, %v1651_v0, %v1650_v7  ;;  %v1082_v14 = vsel %vm1080_vm11, %v1076_v5, 0  ;;  %v1427_v34 = vsel %vm688_vm4, %v1426_v28, %v1425_v30  ;;  %v1503_v30 = vld [vmem:[#allocation3 + $0x8] sm:$0xff] }
 0x129   : > { %v1654_v16 = vsel %vm691_vm5, %v1653_v1, %v1652_v10  ;;  %1974 = vmatpush3.bf16.msra.mxu1 %v1082_v14  ;;  %v1429_v44 = vsel %vm691_vm5, %v1428_v31, %v1427_v34  ;;  %v1486_v14 = vld [vmem:[#allocation2 + $0x8] sm:$0xff] }
 0x12a   : > { %1979 = vmatprep.subr.bf16.mxu1 %v2092_v25  ;;  %v1431_v50 = vsel %vm694_vm6, %v1430_v37, %v1429_v44  ;;  %v1511_v44 = vld [vmem:[#allocation4 + $0x8] sm:$0xff] }
 0x12b   : > { %v1433_v43 = vsel %vm697_vm7, %v1432_v49, %v1431_v50 }
 0x12c   : > { %v1435_v11 = vsel %vm700_vm8, %v1434_v52, %v1433_v43 }
 0x12d   : > { %v1436_v48 = vpack.c.b16 %v1435_v11, %v1435_v11 }
 0x12f   : > { %v1441_v24 = vsel %vm525_vm0, %v1436_v48, 0 }
 0x1b3   : > { %v905_v17 = vpop.xlane.xlu0 %904 }
 0x1b4   : > { %v2328_v23 = vmax.f32 %v2322_v8, %v905_v17  ;;  %v1656_v17 = vsel %vm694_vm6, %v1655_v4, %v1654_v16 }
 0x1b5   : > { %v1658_v18 = vsel %vm697_vm7, %v1657_v9, %v1656_v17 }
 0x1b6   : > { %v907_v38 = vsub.f32 %v2322_v8, %v2328_v23  ;;  %1126 = vst.msk [vmem:[#allocation2] sm:$0xff] %vm520_vm9, %v2328_v23  ;;  %912 = vperm.xlu0 %2038, %v2328_v23   ;;  %v1660_v12 = vsel %vm700_vm8, %v1659_v13, %v1658_v18 }
 0x1b7   : > { %v1661_v20 = vpack.c.b16 %v1660_v12, %v1660_v12 }
 0x1b8   : > { %v908_v36 = vmul.f32 1.442695, %v907_v38 }
 0x1b9   : > { %v1666_v21 = vsel %vm1080_vm11, %v1661_v20, 0 }
 0x1ba   : > { %1986 = vmatpush3.bf16.msra.mxu0 %v1666_v21 }
 0x235   : > { %v913_v39 = vpop.permute.xlu0 %912 }
 0x236   : > { %v915_v40 = vsub.f32 %v2315_v63, %v913_v39  ;;  %v1284_v63 = vsel %vm688_vm4, %v1283_v42, %v1282_v6 }
 0x237   : > { %v1286_v47 = vsel %vm691_vm5, %v1285_v15, %v1284_v63  ;;  %v926_v15 = vld [vmem:[#allocation4] sm:$0xff] }
 0x238   : > { %v916_v41 = vmul.f32 1.442695, %v915_v40  ;;  %v1288_v51 = vsel %vm694_vm6, %v1287_v56, %v1286_v47 }
 0x239   : > { %v1290_v58 = vsel %vm697_vm7, %v1289_v19, %v1288_v51 }
 0x23a   : > { %2040 = vpow2.f32 %v916_v41  ;;  %v1292_v29 = vsel %vm700_vm8, %v1291_v61, %v1290_v58 }
 0x23b   : > { %v1293_v32 = vpack.c.b16 %v1292_v29, %v1292_v29  ;;  %2042 = vpow2.f32 %v908_v36 }
 0x244   : > { %v2041_v53 = vpop.eup %2040 }
 0x245   : > { %v920_v54 = vsel %vm902_vm10, %v2041_v53, 0.0  ;;  %v933_v55 = vpack.c.bf16 %v2041_v53, %v2041_v53  ;;  %v2043_v59 = vpop.eup %2042 }
 0x246   : > { %921 = vadd.xlane.f32.xlu0 %v920_v54  ;;  %v919_v62 = vmul.f32 %v2043_v59, %v918_v60 }
 0x247   : > { %1976 = vmatmul.mubr.msk.bf16.vlgmr.msra.gmra.mrb[0].mxu1 %vm902_vm10, %v933_v55 }
 0x248   : > { %1980 = vmatpush3.bf16.xpose.msra.mxu1 %v1441_v24  ;;  %1981 = vmatprep.mubr.msk.bf16.mxu1 %vm2094_vm1, %v2092_v25 }
 0x24f   : > { %1982 = vmatmul.mubr.msk.bf16.vlgmr.msra.gmra.mrb[4].mxu1 %vm525_vm0, %v1293_v32 }
 0x2d3   : > { %v922_v0 = vpop.xlane.xlu0 %921 }
 0x2d4   : > { %v923_v33 = vadd.f32 %v922_v0, %v919_v62 }
 0x2d6   : > { %925 = vst.msk [vmem:[#allocation3] sm:$0xff] %vm520_vm9, %v923_v33 }
 0x2dd   : > { %v1715_v1 = vld [vmem:[#allocation3] sm:$0xff] }
 0x2de   : > { %2044 = vrcp.f32 %v1715_v1 }
 0x2e8   : > { %v2045_v25 = vpop.eup %2044 }
 0x2e9   : > { %1719 = vperm.xlu0 %2038, %v2045_v25  }
 0x31a   : > { %v1118_v2 = vpop.f32.mrb[0].mxu1 }
 0x31b   : > { %v1977_v3 = vpop.f32.mrb[1].mxu1 }
 0x31c   : > { %v1121_v4 = vpop.f32.mrb[2].mxu1 }
 0x31d   : > { %v1978_v5 = vpop.f32.mrb[3].mxu1 }
 0x322   : > { %v1477_v7 = vpop.f32.mrb[4].mxu1 }
 0x323   : > { %v1483_v9 = vmul.f32 0.25, %v1477_v7  ;;  %v1983_v8 = vpop.f32.mrb[5].mxu1 }
 0x324   : > { %v1480_v23 = vpop.f32.mrb[6].mxu1 }
 0x325   : > { %v1984_v38 = vpop.f32.mrb[7].mxu1  ;;  %v1484_v10 = vadd.f32 %v2312_v57, %v1483_v9 }
 0x327   : > { %v1487_v13 = vsel %vm902_vm10, %v1484_v10, -inf }
 0x328   : > { %1488 = vmax.xlane.f32.xlu1 %v1487_v13 }
 0x368   : > { %v1720_v48 = vpop.permute.xlu0 %1719 }
 0x3b5   : > { %v1489_v16 = vpop.xlane.xlu1 %1488 }
 0x3b6   : > { %v1490_v17 = vmax.f32 %v1486_v14, %v1489_v16 }
 0x3b8   : > { %v1491_v18 = vsub.f32 %v1486_v14, %v1490_v17  ;;  %1710 = vst.msk [vmem:[#allocation2 + $0x8] sm:$0xff] %vm520_vm9, %v1490_v17  ;;  %1496 = vperm.xlu1 %2039, %v1490_v17  }
 0x3ba   : > { %v1492_v57 = vmul.f32 1.442695, %v1491_v18 }
 0x437   : > { %v1497_v12 = vpop.permute.xlu1 %1496 }
 0x438   : > { %v1499_v20 = vsub.f32 %v1484_v10, %v1497_v12 }
 0x43a   : > { %v1500_v21 = vmul.f32 1.442695, %v1499_v20 }
 0x43c   : > { %2046 = vpow2.f32 %v1500_v21 }
 0x43d   : > { %2048 = vpow2.f32 %v1492_v57 }
 0x446   : > { %v2047_v22 = vpop.eup %2046 }
 0x447   : > { %v1505_v26 = vsel %vm902_vm10, %v2047_v22, 0.0  ;;  %v1518_v27 = vpack.c.bf16 %v2047_v22, %v2047_v22  ;;  %v2049_v28 = vpop.eup %2048 }
 0x448   : > { %1506 = vadd.xlane.f32.xlu1 %v1505_v26  ;;  %v1504_v31 = vmul.f32 %v2049_v28, %v1503_v30 }
 0x449   : > { %1988 = vmatmul.mubr.msk.bf16.vlgmr.msra.gmra.mrb[4].mxu0 %vm902_vm10, %v1518_v27 }
 0x459   : > { %1514 = vperm.xlu1 %2039, %v2049_v28  }
 0x4d5   : > { %v1507_v34 = vpop.xlane.xlu1 %1506 }
 0x4d6   : > { %v1508_v35 = vadd.f32 %v1507_v34, %v1504_v31 }
 0x4d8   : > { %1509 = vst.msk [vmem:[#allocation3 + $0x8] sm:$0xff] %vm520_vm9, %v1508_v35 }
 0x4d9   : > { %v1515_v46 = vpop.permute.xlu1 %1514 }
 0x4da   : > { %v1517_v40 = vmul.f32 %v1515_v46, %v1511_v44 }
 0x4df   : > { %v1724_v37 = vld [vmem:[#allocation3 + $0x8] sm:$0xff] }
 0x4e0   : > { %2050 = vrcp.f32 %v1724_v37 }
 0x4ea   : > { %v2051_v39 = vpop.eup %2050 }
 0x4eb   : > { %1728 = vperm.xlu1 %2039, %v2051_v39  }
 0x4ef   : > { %929 = vperm.xlu1 %2039, %v2043_v59  }
 0x51c   : > { %v1702_v45 = vpop.f32.mrb[4].mxu0 }
 0x51d   : > { %v1708_v49 = vadd.f32 %v1702_v45, %v1517_v40  ;;  %v1989_v41 = vpop.f32.mrb[5].mxu0 }
 0x51e   : > { %v1705_v50 = vpop.f32.mrb[6].mxu0 }
 0x51f   : > { %1709 = vst.msk [vmem:[#allocation4 + $0x8] sm:$0xff] %vm525_vm0, %v1708_v49  ;;  %v1990_v42 = vpop.f32.mrb[7].mxu0 }
 0x526   : > { %v1723_v52 = vld [vmem:[#allocation4 + $0x8] sm:$0xff] }
 0x56a   : > { %v1729_v6 = vpop.permute.xlu1 %1728 }
 0x56b   : > { %v1731_v43 = vmul.f32 %v1729_v6, %v1723_v52 }
 0x56d   : > { %1733 = vrot.lane.b32.xlu1 %v1731_v43, %s2097_s8 }
 0x56e   : > { %v930_v63 = vpop.permute.xlu1 %929 }
 0x56f   : > { %v932_v11 = vmul.f32 %v930_v63, %v926_v15 }
 0x571   : > { %v1124_v56 = vadd.f32 %v1118_v2, %v932_v11 }
 0x573   : > { %1125 = vst.msk [vmem:[#allocation4] sm:$0xff] %vm525_vm0, %v1124_v56 }
 0x57a   : > { %v1714_v47 = vld [vmem:[#allocation4] sm:$0xff] }
 0x57b   : > { %v1722_v19 = vmul.f32 %v1720_v48, %v1714_v47 }
 0x5df   : > { %v1734_v51 = vpop.permute.xlu1 %1733 }
 0x5e0   : > { %v1736_v53 = vsel %vm525_vm0, %v1722_v19, %v1734_v51 }
 0x5e1   : > { %v1737_v61 = vpack.c.bf16 %v1736_v53, %v1736_v53 }
 0x5e3   : > { %1739 = vst.msk [vmem:[%s514_s12] sm:$0xf] %vm1738_vm12, %v1737_v61 }
 0x5e4 PF: > { %s14_s19 = sadd.s32 1, %s2090_s19   ;;  %s2430_s15 = smov %s2078_s16 }
 0x5e5   : > { %p11_p10 = scmp.ge.s32.totalorder %s14_s19, 4   ;;  %s2431_s16 = smov %s2162_s24 }
 0x5e6   : > { %s2432_s17 = smov %s2086_s18  ;;  %s2433_s18 = smov %s2435_s20 }
 0x5e7   :  { %13 = sbr.rel (!%p11_p10) target bundleno = 3 (0x3), region = 224 }

// kernel: bit_model_forward.17
= control target key start
LH: loop header
LB: loop body
LE: loop exit
PB: predicated region body
PF: predicated region fallthrough
CT: control target
= control target key end

     0   :  { %vm28_vm0 = vcmask 261120   ;;  %v247_v0 = vmov 0.0   ;;  %vm248_vm1 = vmmov 0   ;;  %vm72_vm2 = vcmask 523264   ;;  %s325_s1 = inlined_call_operand.vmem [shape: bf16[64,32], index: 1, kind: input, shape index: {}]   ;;  %s326_s0 = inlined_call_operand.vmem [shape: bf16[16,64], index: 0, kind: input, shape index: {}]   ;;  %s327_s3 = inlined_call_operand.vmem [shape: bf16[16,32], index: 3, kind: input, shape index: {}]   ;;  %s328_s2 = inlined_call_operand.vmem [shape: f32[1,32], index: 2, kind: input, shape index: {}]   ;;  %s329_s4 = inlined_call_operand.vmem [shape: f32[1,32], index: 4, kind: input, shape index: {}]   ;;  %s330_s5 = inlined_call_operand.vmem [shape: f32[1,32], index: 5, kind: input, shape index: {}]   ;;  %s331_s6 = inlined_call_operand.vmem [shape: bf16[16,32], index: 6, kind: output, shape index: {}]  }
   0x1   :  { %224 = vmatprep.subr.bf16.mxu0 %v247_v0  ;;  %v238_v1 = vld [vmem:[%s325_s1] sm:$0xff]   ;;  %232 = vmatprep.mubr.msk.bf16.mxu0 %vm248_vm1, %v247_v0  ;;  %29 = vst.msk [vmem:[#allocation2] sm:$0xff] %vm28_vm0, %v247_v0  ;;  %30 = vst.msk [vmem:[#allocation2 + $0x8] sm:$0xff] %vm28_vm0, %v247_v0  ;;  %v239_v2 = vld [vmem:[%s325_s1 + $0x8] sm:$0xff]   ;;  %vm195_vm3 = vcmask 257024  }
   0x2   :  { %225 = vmatpush3.bf16.msra.mxu0 %v238_v1  ;;  %v240_v3 = vld [vmem:[%s325_s1 + $0x10] sm:$0xff]   ;;  %v241_v4 = vld [vmem:[%s325_s1 + $0x18] sm:$0xff]   ;;  %v242_v5 = vld [vmem:[%s326_s0] sm:$0xff]  }
   0x3   :  { %226 = vmatprep.subr.bf16.mxu0 %v247_v0  ;;  %v216_v14 = vld [vmem:[%s327_s3] sm:$0xff]  }
   0x4   :  { %v208_v15 = vld [vmem:[%s328_s2] ss:$0 sm:$0xff]  ;;  %v217_v16 = vunpack.c.l.bf16 %v216_v14  ;;  %v218_v19 = vunpack.c.h.bf16 %v216_v14 }
   0x5   :  { %v209_v43 = vld [vmem:[%s329_s4] ss:$0 sm:$0xff] }
   0x6   :  { %227 = vmatpush3.bf16.msra.mxu0 %v239_v2  ;;  %v210_v45 = vld [vmem:[%s330_s5] ss:$0 sm:$0xff] }
   0x7   :  { %228 = vmatprep.subr.bf16.mxu0 %v247_v0 }
   0x8   :  { %v31_v6 = vld [vmem:[#allocation2] sm:$0xff]  ;;  %v32_v8 = vld [vmem:[#allocation2 + $0x8] sm:$0xff] }
   0xa   :  { %229 = vmatpush3.bf16.msra.mxu0 %v240_v3 }
   0xb   :  { %230 = vmatprep.subr.bf16.mxu0 %v247_v0 }
   0xe   :  { %231 = vmatpush3.bf16.msra.mxu0 %v241_v4 }
  0x11   :  { %233 = vmatmul.mubr.msk.bf16.vlgmr.msra.gmra.mrb[0].mxu0 %vm72_vm2, %v242_v5 }
  0xe4   :  { %v110_v7 = vpop.f32.mrb[0].mxu0 }
  0xe5   :  { %v117_v9 = vadd.f32 %v110_v7, %v31_v6  ;;  %v234_v10 = vpop.f32.mrb[1].mxu0 }
  0xe6   :  { %v113_v11 = vpop.f32.mrb[2].mxu0 }
  0xe7   :  { %120 = vst.msk [vmem:[#allocation2] sm:$0xff] %vm28_vm0, %v117_v9  ;;  %v118_v12 = vadd.f32 %v113_v11, %v32_v8  ;;  %v235_v13 = vpop.f32.mrb[3].mxu0 }
  0xe9   :  { %121 = vst.msk [vmem:[#allocation2 + $0x8] sm:$0xff] %vm28_vm0, %v118_v12 }
  0xee   :  { %v125_v17 = vld [vmem:[#allocation2] sm:$0xff] }
  0xef   :  { %v134_v18 = vadd.f32 %v208_v15, %v125_v17 }
  0xf0   :  { %v126_v20 = vld [vmem:[#allocation2 + $0x8] sm:$0xff] }
  0xf1   :  { %v140_v21 = vadd.f32 %v217_v16, %v134_v18  ;;  %v135_v22 = vadd.f32 %v208_v15, %v126_v20 }
  0xf3   :  { %v142_v23 = vsel %vm28_vm0, %v140_v21, 0.0  ;;  %v141_v24 = vadd.f32 %v218_v19, %v135_v22 }
  0xf4   :  { %143 = vadd.xlane.f32.xlu0 %v142_v23 }
  0xf5   :  { %v145_v25 = vsel %vm28_vm0, %v141_v24, 0.0 }
  0xf8   :  { %146 = vadd.xlane.f32.xlu0 %v145_v25 }
 0x181   :  { %v144_v26 = vpop.xlane.xlu0 %143 }
 0x182   :  { %v149_v27 = vmul.f32 0.03125, %v144_v26 }
 0x184   :  { %v151_v28 = vsub.f32 %v140_v21, %v149_v27 }
 0x185   :  { %v147_v29 = vpop.xlane.xlu0 %146 }
 0x186   :  { %v150_v30 = vmul.f32 0.03125, %v147_v29  ;;  %v153_v31 = vmul.f32 %v151_v28, %v151_v28 }
 0x188   :  { %v152_v32 = vsub.f32 %v141_v24, %v150_v30  ;;  %v155_v33 = vsel %vm28_vm0, %v153_v31, 0.0 }
 0x189   :  { %156 = vadd.xlane.f32.xlu1 %v155_v33 }
 0x18a   :  { %v154_v34 = vmul.f32 %v152_v32, %v152_v32 }
 0x18c   :  { %v158_v35 = vsel %vm28_vm0, %v154_v34, 0.0 }
 0x18d   :  { %159 = vadd.xlane.f32.xlu1 %v158_v35 }
 0x216   :  { %v157_v36 = vpop.xlane.xlu1 %156 }
 0x217   :  { %v161_v37 = vmul.f32 0.03125, %v157_v36 }
 0x219   :  { %v163_v38 = vadd.f32 1e-12, %v161_v37 }
 0x21a   :  { %v160_v39 = vpop.xlane.xlu1 %159 }
 0x21b   :  { %243 = vrsqrt.f32 %v163_v38  ;;  %v162_v40 = vmul.f32 0.03125, %v160_v39 }
 0x21d   :  { %v164_v41 = vadd.f32 1e-12, %v162_v40 }
 0x21f   :  { %245 = vrsqrt.f32 %v164_v41 }
 0x225   :  { %v244_v42 = vpop.eup %243 }
 0x226   :  { %v167_v44 = vmul.f32 %v244_v42, %v151_v28 }
 0x228   :  { %v176_v46 = vmul.f32 %v209_v43, %v167_v44 }
 0x229   :  { %v246_v47 = vpop.eup %245 }
 0x22a   :  { %v185_v48 = vadd.f32 %v210_v45, %v176_v46  ;;  %v168_v49 = vmul.f32 %v246_v47, %v152_v32 }
 0x22c   :  { %v213_v50 = vpack.c.bf16 %v185_v48, %v185_v48  ;;  %v177_v51 = vmul.f32 %v209_v43, %v168_v49 }
 0x22e   :  { %196 = vst.msk [vmem:[%s331_s6] sm:$0xf] %vm195_vm3, %v213_v50  ;;  %v186_v52 = vadd.f32 %v210_v45, %v177_v51 }
 0x230   :  { %v214_v53 = vpack.c.bf16 %v186_v52, %v186_v52 }
 0x232   :  { %197 = vst.msk [vmem:[%s331_s6 + $0x4] sm:$0xf] %vm195_vm3, %v214_v53 }

// kernel: bit_model_forward.23
= control target key start
LH: loop header
LB: loop body
LE: loop exit
PB: predicated region body
PF: predicated region fallthrough
CT: control target
= control target key end

     0   :  { %v147_v1 = vmov 0.0   ;;  %vm148_vm0 = vmmov 0   ;;  %s194_s0 = inlined_call_operand.vmem [shape: bf16[2,32], index: 0, kind: input, shape index: {}]   ;;  %s195_s1 = inlined_call_operand.vmem [shape: bf16[32,32], index: 1, kind: input, shape index: {}]   ;;  %s196_s2 = inlined_call_operand.vmem [shape: f32[1,32], index: 2, kind: input, shape index: {}]   ;;  %s197_s3 = inlined_call_operand.hbm [shape: f32[2,32], index: 3, kind: output, shape index: {}]  }
   0x1   :  { %v119_v0 = vld [vmem:[%s195_s1] sm:$0xff]   ;;  %108 = vmatprep.subr.bf16.mxu0 %v147_v1  ;;  %v120_v2 = vld [vmem:[%s195_s1 + $0x8] sm:$0xff]   ;;  %112 = vmatprep.mubr.msk.bf16.mxu0 %vm148_vm0, %v147_v1 }
   0x2   :  { %109 = vmatpush3.bf16.msra.mxu0 %v119_v0 }
   0x3   :  { %110 = vmatprep.subr.bf16.mxu0 %v147_v1 }
   0x4   :  { %8 = vsyncpa [#allocation3], 0  ;;  %v16_v3 = vld [vmem:[%s194_s0] sm:$0x1]  ;;  %vm40_vm1 = vcmask 261120   ;;  %s149_s1 = smov [#allocation2]  }
   0x5   :  { %v101_v4 = vld [vmem:[%s196_s2] ss:$0 sm:$0xff]  ;;  %s93_s20 = sshll.u32 %s149_s1, 4  ;;  %vm85_vm2 = vcmask 254976   ;;  %s94_s20 = int_to_ptr.vmem [resolvable:$true] %s93_s20 }
   0x6   :  { %111 = vmatpush3.bf16.msra.mxu0 %v120_v2  ;;  %s123_s21 = scalar_lea.vmem %s94_s20, 32  ;;  %p128_p1 = scmp.lt.s32.totalorder %s94_s20, %s94_s20 }
   0x7   :  { %p124_p0 = scmp.ne.s32.totalorder %s94_s20, %s123_s21  ;;  %p129_p2 = scmp.lt.s32.totalorder %s123_s21, %s123_s21 }
   0x9   :  { %113 = vmatmul.mubr.msk.bf16.vlgmr.msra.gmra.mrb[0].mxu0 %vm40_vm1, %v16_v3  ;;  %p130_p3 = por %p129_p2, %p128_p1 }
   0xb   :  { %p131_p4 = pnand %p130_p3, %p124_p0 }
  0xdc   :  { %v78_v5 = vpop.f32.mrb[0].mxu0 }
  0xdd   :  { %v79_v6 = vadd.f32 %v101_v4, %v78_v5  ;;  %v114_v7 = vpop.f32.mrb[1].mxu0 }
  0xde   :  { %v81_v8 = vpop.f32.mrb[2].mxu0 }
  0xdf   :  { %121 = vtanh.f32 %v79_v6  ;;  %v115_v9 = vpop.f32.mrb[3].mxu0 }
  0xe9   :  { %v122_v10 = vpop.eup %121 }
  0xea   :  { %86 = vst.msk [vmem:[#allocation2] sm:$0x3] %vm85_vm2, %v122_v10 }
  0xeb   :  { %134 = shalt.err (!%p131_p4)
}
  0xec   :  { %s135_s22 = scalar_lea.hbm %s197_s3, 32 }
  0xed   :  { %p136_p5 = scmp.ne.s32.totalorder %s197_s3, %s135_s22  ;;  %p139_p6 = scmp.lt.u32.totalorder %s135_s22, %s197_s3 }
  0xef   :  { %p141_p7 = pnand %p139_p6, %p136_p5 }
  0xf1   :  { %144 = shalt.err (!%p141_p7)
}
  0xf2   :  { %96 = dma.vmem_to_hbm [thread:$0]  %s94_s20, 32, %s197_s3, [#allocation3]  }
  0xf3   :  { %145 = dma.done.wait [#allocation3], 32  }
  0xf4   :  { %146 = vsyncadd [#allocation3], 4294967264 }
  0xf5   :  { %100 = vsyncpa [#allocation3], 1 }

</bundles_post_ra>
